<compile_context>
chip_gen: v7x
topology: tpu7x:2x2x1
jax: 0.10.0
libtpu: 0.0.40
codegen_flags: <defaults>
</compile_context>

<pallas_src>
import math
from functools import partial

import numpy as np
import jax
import jax.numpy as jnp
from jax.experimental import pallas as pl
from jax.experimental.pallas import tpu as pltpu  # noqa: F401  (grid-less kernel: no TPU-specific params needed)

MXU_DTYPE = jnp.bfloat16   # MXU operand dtype; accumulation stays f32.
LN_EPS = 1e-5
LANE = 128
NEG_INF = -1e30


# ------------------------------------------------------------------
# In-kernel helpers
# ------------------------------------------------------------------

def _mm(a, b):
    """MXU matmul: bf16 operands (weights pre-cast in HBM), f32 accumulation."""
    return jnp.dot(a.astype(MXU_DTYPE), b.astype(MXU_DTYPE),
                   preferred_element_type=jnp.float32)


def _mm_t(a, b):
    """a @ b.T via dot_general contraction dims (no explicit transpose)."""
    return jax.lax.dot_general(
        a.astype(MXU_DTYPE), b.astype(MXU_DTYPE),
        dimension_numbers=(((1,), (1,)), ((), ())),
        preferred_element_type=jnp.float32)


def _ln(x, g, b, eps=LN_EPS):
    mu = jnp.mean(x, axis=-1, keepdims=True)
    var = jnp.mean((x - mu) ** 2, axis=-1, keepdims=True)
    return (x - mu) * jax.lax.rsqrt(var + eps) * g + b


# ------------------------------------------------------------------
# Single fused Pallas kernel: encoder + transformer + final LN + classifier
# ------------------------------------------------------------------

def _track_kernel(*refs, n_convs, num_layers, num_heads):
    x_ref = refs[0]
    conv_refs = refs[1:1 + 2 * n_convs]
    (fc_w_ref, fc_b_ref, pe_ref, kv_mask_ref, attn_bias_ref,
     ln1_g_ref, ln1_b_ref, wq_ref, bq_ref, wk_ref, bk_ref, wv_ref, bv_ref,
     wo_ref, bo_ref, ln2_g_ref, ln2_b_ref, w1_ref, b1_ref, w2_ref, b2_ref,
     lnf_g_ref, lnf_b_ref, cls_w_ref, cls_b_ref, o_ref) = refs[1 + 2 * n_convs:]

    # ---- image encoder: conv stack (dense matmuls) + ReLU -> flatten -> fc -> +pos-encoding ----
    h = x_ref[...]                                              # (T, Cin*H*W) f32
    for i in range(n_convs):
        h = jnp.maximum(_mm(h, conv_refs[2 * i][...]) + conv_refs[2 * i + 1][...], 0.0)
    x = _mm(h, fc_w_ref[...]) + fc_b_ref[...] + pe_ref[...]     # (T, E) tokens, stay in VMEM

    T = x.shape[0]
    kv_mask = kv_mask_ref[...]                                  # (H*T, E): 1 on head-owned lanes
    attn_bias = attn_bias_ref[...]                              # (H*T, H*T): 0 diag blocks, -1e30 off

    for l in range(num_layers):                                 # static unroll over layers
        # ---- MHSA (pre-norm), all heads batched on the sublane axis ----
        hn = _ln(x, ln1_g_ref[l], ln1_b_ref[l])
        q = _mm(hn, wq_ref[l]) + bq_ref[l]                      # 1/sqrt(Dh) folded into wq/bq offline
        k = _mm(hn, wk_ref[l]) + bk_ref[l]
        v = _mm(hn, wv_ref[l]) + bv_ref[l]
        qh = jnp.concatenate([q] * num_heads, axis=0)           # (H*T, E)
        kh = jnp.concatenate([k] * num_heads, axis=0) * kv_mask  # zero non-owned lanes per head
        vh = jnp.concatenate([v] * num_heads, axis=0) * kv_mask
        s = _mm_t(qh, kh) + attn_bias                           # (H*T, H*T); diag blocks = per-head scores
        m = jnp.max(s, axis=-1, keepdims=True)
        p = jnp.exp(s - m)
        p = p * pl.reciprocal(jnp.sum(p, axis=-1, keepdims=True), approx=True)
        oh = _mm(p, vh)                                         # (H*T, E), per-head lanes disjoint
        attn = oh[0:T, :]                                       # head "concat" = sum of aligned sublane slices
        for hh in range(1, num_heads):
            attn = attn + oh[hh * T:(hh + 1) * T, :]
        x = x + _mm(attn, wo_ref[l]) + bo_ref[l]

        # ---- MLP (pre-norm) ----
        hn = _ln(x, ln2_g_ref[l], ln2_b_ref[l])
        # tanh GELU (EUP) per perf feedback; deviates slightly from torch's exact-erf GELU.
        hmid = jax.nn.gelu(_mm(hn, w1_ref[l]) + b1_ref[l], approximate=True)
        x = x + _mm(hmid, w2_ref[l]) + b2_ref[l]

    # ---- final LayerNorm + classifier (lane-padded to 128 -> single unmasked store) ----
    hn = _ln(x, lnf_g_ref[...], lnf_b_ref[...])
    o_ref[...] = _mm(hn, cls_w_ref[...]) + cls_b_ref[...]


# ------------------------------------------------------------------
# One-time weight / buffer preprocessing (hoisted out of the forward)
# ------------------------------------------------------------------

def conv_to_dense(w, b, Hin, Win, stride=2, pad=1):
    """Lower Conv2d(k, stride, pad) to a dense matmul:
       x.reshape(N, Cin*Hin*Win) @ T + bvec  ==  conv2d(x, w, b).reshape(N, Cout*Ho*Wo)."""
    Cout, Cin, kk, _ = w.shape
    Ho = (Hin + 2 * pad - kk) // stride + 1
    Wo = (Win + 2 * pad - kk) // stride + 1
    Sh = np.zeros((kk, Hin, Ho), np.float32)
    Sw = np.zeros((kk, Win, Wo), np.float32)
    for d in range(kk):
        for p in range(Ho):
            hi = stride * p - pad + d
            if 0 <= hi < Hin:
                Sh[d, hi, p] = 1.0
        for qq in range(Wo):
            wi = stride * qq - pad + d
            if 0 <= wi < Win:
                Sw[d, wi, qq] = 1.0
    T = jnp.einsum('ocde,dhp,ewq->chwopq', w, jnp.asarray(Sh), jnp.asarray(Sw))
    T = T.reshape(Cin * Hin * Win, Cout * Ho * Wo)
    bvec = jnp.repeat(b, Ho * Wo)
    return T, bvec, (Ho, Wo)


def positionalencoding1d(d_model, length):
    if d_model % 2 != 0:
        raise ValueError("Cannot use sin/cos positional encoding with odd dim (got dim=%d)" % d_model)
    position = jnp.arange(length, dtype=jnp.float32)[:, None]
    div_term = jnp.exp(jnp.arange(0, d_model, 2, dtype=jnp.float32) * -(math.log(10000.0) / d_model))
    pe = jnp.zeros((length, d_model), jnp.float32)
    pe = pe.at[:, 0::2].set(jnp.sin(position * div_term))
    pe = pe.at[:, 1::2].set(jnp.cos(position * div_term))
    return jnp.transpose(pe)[:, None, :]                  # (emb_dim, 1, tokens)


def interpolate_pe_linear(pe, out_len):
    """F.interpolate(pe, size=out_len, mode='linear', align_corners=False) -> (out_len, emb_dim)."""
    E, _, L = pe.shape
    vals = pe[:, 0, :]
    scale = L / out_len
    src = (jnp.arange(out_len, dtype=jnp.float32) + 0.5) * scale - 0.5
    src = jnp.clip(src, 0.0, float(L - 1))
    lo = jnp.floor(src).astype(jnp.int32)
    hi = jnp.minimum(lo + 1, L - 1)
    frac = src - lo.astype(jnp.float32)
    out = vals[:, lo] * (1.0 - frac) + vals[:, hi] * frac
    return out.T                                           # (out_len, E)


def prepare_params(params, *, track_len, image_hw, num_heads):
    """Run ONCE: conv->dense lowering, qkv split + scale fold, layer stacking, bf16 pre-cast,
    classifier lane-padding, PE interpolation, attention masks."""
    enc = params["encoder"]
    E = enc["fc_w"].shape[1]
    assert E % num_heads == 0
    Dh = E // num_heads
    scale = 1.0 / math.sqrt(Dh)

    conv_mats, conv_biases = [], []
    hw = image_hw
    for conv in enc["convs"]:
        Tm, bv, hw = conv_to_dense(conv["w"], conv["b"], hw[0], hw[1], stride=2, pad=1)
        conv_mats.append(Tm.astype(MXU_DTYPE))
        conv_biases.append(bv.reshape(1, -1).astype(jnp.float32))

    blocks = params["blocks"]

    def stack(fn):
        return jnp.stack([fn(blk) for blk in blocks])

    HT = num_heads * track_len
    row_head = np.arange(HT) // track_len
    kv_mask = (row_head[:, None] == (np.arange(E) // Dh)[None, :]).astype(np.float32)
    attn_bias = np.where(row_head[:, None] == row_head[None, :], 0.0, NEG_INF).astype(np.float32)

    C = params["cls_w"].shape[1]
    C_pad = ((C + LANE - 1) // LANE) * LANE
    cls_w_p = jnp.zeros((E, C_pad), MXU_DTYPE).at[:, :C].set(params["cls_w"].astype(MXU_DTYPE))
    cls_b_p = jnp.zeros((1, C_pad), jnp.float32).at[:, :C].set(params["cls_b"][None, :])

    return {
        "conv_mats": conv_mats, "conv_biases": conv_biases,
        "fc_w": enc["fc_w"].astype(MXU_DTYPE),
        "fc_b": enc["fc_b"].reshape(1, E).astype(jnp.float32),
        "pe": interpolate_pe_linear(params["pos_embedding"], track_len).astype(jnp.float32),
        "kv_mask": jnp.asarray(kv_mask), "attn_bias": jnp.asarray(attn_bias),
        "ln1_g": stack(lambda b: b["ln1_g"].reshape(1, E)),
        "ln1_b": stack(lambda b: b["ln1_b"].reshape(1, E)),
        "wq": stack(lambda b: (b["qkv_w"][:, :E] * scale).astype(MXU_DTYPE)),
        "bq": stack(lambda b: (b["qkv_b"][:E] * scale).reshape(1, E)),
        "wk": stack(lambda b: b["qkv_w"][:, E:2 * E].astype(MXU_DTYPE)),
        "bk": stack(lambda b: b["qkv_b"][E:2 * E].reshape(1, E)),
        "wv": stack(lambda b: b["qkv_w"][:, 2 * E:].astype(MXU_DTYPE)),
        "bv": stack(lambda b: b["qkv_b"][2 * E:].reshape(1, E)),
        "wo": stack(lambda b: b["proj_w"].astype(MXU_DTYPE)),
        "bo": stack(lambda b: b["proj_b"].reshape(1, E)),
        "ln2_g": stack(lambda b: b["ln2_g"].reshape(1, E)),
        "ln2_b": stack(lambda b: b["ln2_b"].reshape(1, E)),
        "w1": stack(lambda b: b["mlp_w1"].astype(MXU_DTYPE)),
        "b1": stack(lambda b: b["mlp_b1"].reshape(1, -1)),
        "w2": stack(lambda b: b["mlp_w2"].astype(MXU_DTYPE)),
        "b2": stack(lambda b: b["mlp_b2"].reshape(1, E)),
        "lnf_g": params["ln_g"].reshape(1, E), "lnf_b": params["ln_b"].reshape(1, E),
        "cls_w": cls_w_p, "cls_b": cls_b_p,
    }


# ------------------------------------------------------------------
# Forward
# ------------------------------------------------------------------

def track_classifier_forward(img, kp, *, num_heads, num_classes):
    """img: (batch, track_len, H, W)  ->  logits: (1, track_len, num_classes)."""
    B, T, H, W = img.shape
    # 'b track_len h w -> track_len b h w': conv batch = track_len, conv channels = img batch.
    x = jnp.transpose(img, (1, 0, 2, 3)).reshape(T, B * H * W).astype(jnp.float32)

    n_convs = len(kp["conv_mats"])
    L = kp["wq"].shape[0]
    C_pad = kp["cls_w"].shape[1]

    args = [x]
    for tm, bv in zip(kp["conv_mats"], kp["conv_biases"]):
        args += [tm, bv]
    args += [kp["fc_w"], kp["fc_b"], kp["pe"], kp["kv_mask"], kp["attn_bias"]]
    args += [kp[name] for name in ("ln1_g", "ln1_b", "wq", "bq", "wk", "bk", "wv", "bv",
                                   "wo", "bo", "ln2_g", "ln2_b", "w1", "b1", "w2", "b2")]
    args += [kp["lnf_g"], kp["lnf_b"], kp["cls_w"], kp["cls_b"]]

    logits_p = pl.pallas_call(
        partial(_track_kernel, n_convs=n_convs, num_layers=L, num_heads=num_heads),
        out_shape=jax.ShapeDtypeStruct((T, C_pad), jnp.float32),
    )(*args)

    # 'tokens batch c -> batch tokens c' (transformer batch is always 1); drop lane padding.
    return logits_p[None, :, :num_classes]


# ------------------------------------------------------------------
# Deterministic parameter init
# ------------------------------------------------------------------

def init_params(key, *, in_channels, channels, spatial, emb_dim, num_layer,
                num_classes, pos_len):
    keys = iter(jax.random.split(key, 64))

    def w(shape, scale=0.02):
        return scale * jax.random.normal(next(keys), shape, jnp.float32)

    convs = []
    c_in, s = in_channels, spatial
    for c_out in channels:
        convs.append({"w": w((c_out, c_in, 3, 3)), "b": jnp.zeros((c_out,), jnp.float32)})
        c_in = c_out
        s = (s + 2 - 3) // 2 + 1
    flat = c_in * s * s
    encoder = {"convs": convs,
               "fc_w": w((flat, emb_dim)), "fc_b": jnp.zeros((emb_dim,), jnp.float32)}

    blocks = []
    for _ in range(num_layer):
        blocks.append({
            "ln1_g": jnp.ones((emb_dim,), jnp.float32), "ln1_b": jnp.zeros((emb_dim,), jnp.float32),
            "qkv_w": w((emb_dim, 3 * emb_dim)), "qkv_b": jnp.zeros((3 * emb_dim,), jnp.float32),
            "proj_w": w((emb_dim, emb_dim)), "proj_b": jnp.zeros((emb_dim,), jnp.float32),
            "ln2_g": jnp.ones((emb_dim,), jnp.float32), "ln2_b": jnp.zeros((emb_dim,), jnp.float32),
            "mlp_w1": w((emb_dim, 4 * emb_dim)), "mlp_b1": jnp.zeros((4 * emb_dim,), jnp.float32),
            "mlp_w2": w((4 * emb_dim, emb_dim)), "mlp_b2": jnp.zeros((emb_dim,), jnp.float32),
        })

    return {
        "pos_embedding": positionalencoding1d(emb_dim, pos_len),
        "encoder": encoder,
        "blocks": blocks,
        "ln_g": jnp.ones((emb_dim,), jnp.float32), "ln_b": jnp.zeros((emb_dim,), jnp.float32),
        "cls_w": w((emb_dim, num_classes)), "cls_b": jnp.zeros((num_classes,), jnp.float32),
    }


# ------------------------------------------------------------------

if __name__ == "__main__":
    # Small shapes consistent with the module: batch=1 (conv channel after rearrange),
    # track_len=8 tokens, 16x16 patches, emb_dim=32, 2 layers, 4 heads, 2 classes.
    batch, track_len, H, W = 1, 8, 16, 16
    emb_dim, num_layer, num_head, num_classes = 32, 2, 4, 2
    pos_embedding_length = 16

    key = jax.random.PRNGKey(0)
    k_img, k_par = jax.random.split(key)
    img = jax.random.normal(k_img, (batch, track_len, H, W), jnp.float32)

    params = init_params(
        k_par, in_channels=batch, channels=[8, 16, 32], spatial=H,
        emb_dim=emb_dim, num_layer=num_layer, num_classes=num_classes,
        pos_len=pos_embedding_length)

    # One-time preprocessing (hoisted out of the per-call path).
    kp = prepare_params(params, track_len=track_len, image_hw=(H, W), num_heads=num_head)

    fwd = jax.jit(partial(track_classifier_forward, num_heads=num_head, num_classes=num_classes))
    out = jax.block_until_ready(fwd(img, kp))

    assert out.shape == (1, track_len, num_classes), out.shape
    assert bool(jnp.all(jnp.isfinite(out)))
    print("KERNEL_OK")
</pallas_src>

<mosaic_0001>
module attributes {stable_mosaic.version = 11 : i64} {
  func.func @_track_kernel(%arg0: memref<8x256xf32, #tpu.memory_space<vmem>>, %arg1: memref<256x512xbf16, #tpu.memory_space<vmem>>, %arg2: memref<1x512xf32, #tpu.memory_space<vmem>>, %arg3: memref<512x256xbf16, #tpu.memory_space<vmem>>, %arg4: memref<1x256xf32, #tpu.memory_space<vmem>>, %arg5: memref<256x128xbf16, #tpu.memory_space<vmem>>, %arg6: memref<1x128xf32, #tpu.memory_space<vmem>>, %arg7: memref<128x32xbf16, #tpu.memory_space<vmem>>, %arg8: memref<1x32xf32, #tpu.memory_space<vmem>>, %arg9: memref<8x32xf32, #tpu.memory_space<vmem>>, %arg10: memref<32x32xf32, #tpu.memory_space<vmem>>, %arg11: memref<32x32xf32, #tpu.memory_space<vmem>>, %arg12: memref<2x1x32xf32, #tpu.memory_space<vmem>>, %arg13: memref<2x1x32xf32, #tpu.memory_space<vmem>>, %arg14: memref<2x32x32xbf16, #tpu.memory_space<vmem>>, %arg15: memref<2x1x32xf32, #tpu.memory_space<vmem>>, %arg16: memref<2x32x32xbf16, #tpu.memory_space<vmem>>, %arg17: memref<2x1x32xf32, #tpu.memory_space<vmem>>, %arg18: memref<2x32x32xbf16, #tpu.memory_space<vmem>>, %arg19: memref<2x1x32xf32, #tpu.memory_space<vmem>>, %arg20: memref<2x32x32xbf16, #tpu.memory_space<vmem>>, %arg21: memref<2x1x32xf32, #tpu.memory_space<vmem>>, %arg22: memref<2x1x32xf32, #tpu.memory_space<vmem>>, %arg23: memref<2x1x32xf32, #tpu.memory_space<vmem>>, %arg24: memref<2x32x128xbf16, #tpu.memory_space<vmem>>, %arg25: memref<2x1x128xf32, #tpu.memory_space<vmem>>, %arg26: memref<2x128x32xbf16, #tpu.memory_space<vmem>>, %arg27: memref<2x1x32xf32, #tpu.memory_space<vmem>>, %arg28: memref<1x32xf32, #tpu.memory_space<vmem>>, %arg29: memref<1x32xf32, #tpu.memory_space<vmem>>, %arg30: memref<32x128xbf16, #tpu.memory_space<vmem>>, %arg31: memref<1x128xf32, #tpu.memory_space<vmem>>, %arg32: memref<8x128xf32, #tpu.memory_space<vmem>>) attributes {dimension_semantics = [], scalar_prefetch = 0 : i64, scratch_operands = 0 : i64, tpu.core_type = #tpu.core_type<tc>} {
    %c0 = arith.constant 0 : index
    %c0_0 = arith.constant 0 : index
    %0 = vector.load %arg0[%c0, %c0_0] : memref<8x256xf32, #tpu.memory_space<vmem>>, vector<8x256xf32>
    %c0_1 = arith.constant 0 : index
    %c0_2 = arith.constant 0 : index
    %1 = vector.load %arg1[%c0_1, %c0_2] : memref<256x512xbf16, #tpu.memory_space<vmem>>, vector<256x512xbf16>
    %2 = arith.truncf %0 : vector<8x256xf32> to vector<8x256xbf16>
    %cst = arith.constant dense<0.000000e+00> : vector<8x512xf32>
    %3 = tpu.matmul %2, %1, %cst {dimension_numbers = #tpu.dot_dimension_numbers<[1], [0], [0], [1], [0, 0, 1, 1], [], []>} : vector<8x256xbf16>, vector<256x512xbf16>, vector<8x512xf32> -> vector<8x512xf32>
    %c0_3 = arith.constant 0 : index
    %c0_4 = arith.constant 0 : index
    %4 = vector.load %arg2[%c0_3, %c0_4] : memref<1x512xf32, #tpu.memory_space<vmem>>, vector<1x512xf32>
    %5 = vector.broadcast %4 : vector<1x512xf32> to vector<8x512xf32>
    %6 = arith.addf %3, %5 : vector<8x512xf32>
    %cst_5 = arith.constant 0.000000e+00 : f32
    %7 = vector.broadcast %cst_5 : f32 to vector<8x512xf32>
    %8 = arith.maximumf %6, %7 : vector<8x512xf32>
    %c0_6 = arith.constant 0 : index
    %c0_7 = arith.constant 0 : index
    %9 = vector.load %arg3[%c0_6, %c0_7] : memref<512x256xbf16, #tpu.memory_space<vmem>>, vector<512x256xbf16>
    %10 = arith.truncf %8 : vector<8x512xf32> to vector<8x512xbf16>
    %cst_8 = arith.constant dense<0.000000e+00> : vector<8x256xf32>
    %11 = tpu.matmul %10, %9, %cst_8 {dimension_numbers = #tpu.dot_dimension_numbers<[1], [0], [0], [1], [0, 0, 1, 1], [], []>} : vector<8x512xbf16>, vector<512x256xbf16>, vector<8x256xf32> -> vector<8x256xf32>
    %c0_9 = arith.constant 0 : index
    %c0_10 = arith.constant 0 : index
    %12 = vector.load %arg4[%c0_9, %c0_10] : memref<1x256xf32, #tpu.memory_space<vmem>>, vector<1x256xf32>
    %13 = vector.broadcast %12 : vector<1x256xf32> to vector<8x256xf32>
    %14 = arith.addf %11, %13 : vector<8x256xf32>
    %cst_11 = arith.constant 0.000000e+00 : f32
    %15 = vector.broadcast %cst_11 : f32 to vector<8x256xf32>
    %16 = arith.maximumf %14, %15 : vector<8x256xf32>
    %c0_12 = arith.constant 0 : index
    %c0_13 = arith.constant 0 : index
    %17 = vector.load %arg5[%c0_12, %c0_13] : memref<256x128xbf16, #tpu.memory_space<vmem>>, vector<256x128xbf16>
    %18 = arith.truncf %16 : vector<8x256xf32> to vector<8x256xbf16>
    %cst_14 = arith.constant dense<0.000000e+00> : vector<8x128xf32>
    %19 = tpu.matmul %18, %17, %cst_14 {dimension_numbers = #tpu.dot_dimension_numbers<[1], [0], [0], [1], [0, 0, 1, 1], [], []>} : vector<8x256xbf16>, vector<256x128xbf16>, vector<8x128xf32> -> vector<8x128xf32>
    %c0_15 = arith.constant 0 : index
    %c0_16 = arith.constant 0 : index
    %20 = vector.load %arg6[%c0_15, %c0_16] : memref<1x128xf32, #tpu.memory_space<vmem>>, vector<1x128xf32>
    %21 = vector.broadcast %20 : vector<1x128xf32> to vector<8x128xf32>
    %22 = arith.addf %19, %21 : vector<8x128xf32>
    %cst_17 = arith.constant 0.000000e+00 : f32
    %23 = vector.broadcast %cst_17 : f32 to vector<8x128xf32>
    %24 = arith.maximumf %22, %23 : vector<8x128xf32>
    %c0_18 = arith.constant 0 : index
    %c0_19 = arith.constant 0 : index
    %25 = vector.load %arg7[%c0_18, %c0_19] : memref<128x32xbf16, #tpu.memory_space<vmem>>, vector<128x32xbf16>
    %26 = arith.truncf %24 : vector<8x128xf32> to vector<8x128xbf16>
    %cst_20 = arith.constant dense<0.000000e+00> : vector<8x32xf32>
    %27 = tpu.matmul %26, %25, %cst_20 {dimension_numbers = #tpu.dot_dimension_numbers<[1], [0], [0], [1], [0, 0, 1, 1], [], []>} : vector<8x128xbf16>, vector<128x32xbf16>, vector<8x32xf32> -> vector<8x32xf32>
    %c0_21 = arith.constant 0 : index
    %c0_22 = arith.constant 0 : index
    %28 = vector.load %arg8[%c0_21, %c0_22] : memref<1x32xf32, #tpu.memory_space<vmem>>, vector<1x32xf32>
    %29 = vector.broadcast %28 : vector<1x32xf32> to vector<8x32xf32>
    %30 = arith.addf %27, %29 : vector<8x32xf32>
    %c0_23 = arith.constant 0 : index
    %c0_24 = arith.constant 0 : index
    %31 = vector.load %arg9[%c0_23, %c0_24] : memref<8x32xf32, #tpu.memory_space<vmem>>, vector<8x32xf32>
    %32 = arith.addf %30, %31 : vector<8x32xf32>
    %c0_25 = arith.constant 0 : index
    %c0_26 = arith.constant 0 : index
    %33 = vector.load %arg10[%c0_25, %c0_26] : memref<32x32xf32, #tpu.memory_space<vmem>>, vector<32x32xf32>
    %c0_27 = arith.constant 0 : index
    %c0_28 = arith.constant 0 : index
    %34 = vector.load %arg11[%c0_27, %c0_28] : memref<32x32xf32, #tpu.memory_space<vmem>>, vector<32x32xf32>
    %c0_29 = arith.constant 0 : index
    %c0_30 = arith.constant 0 : index
    %c0_31 = arith.constant 0 : index
    %35 = vector.load %arg12[%c0_29, %c0_30, %c0_31] : memref<2x1x32xf32, #tpu.memory_space<vmem>>, vector<1x1x32xf32>
    %36 = vector.shape_cast %35 : vector<1x1x32xf32> to vector<1x32xf32>
    %c0_32 = arith.constant 0 : index
    %c0_33 = arith.constant 0 : index
    %c0_34 = arith.constant 0 : index
    %37 = vector.load %arg13[%c0_32, %c0_33, %c0_34] : memref<2x1x32xf32, #tpu.memory_space<vmem>>, vector<1x1x32xf32>
    %38 = vector.shape_cast %37 : vector<1x1x32xf32> to vector<1x32xf32>
    %cst_35 = arith.constant dense<0.000000e+00> : vector<8xf32>
    %39 = vector.multi_reduction <add>, %32, %cst_35 [1] : vector<8x32xf32> to vector<8xf32>
    %40 = vector.shape_cast %39 : vector<8xf32> to vector<8x1xf32>
    %cst_36 = arith.constant 3.200000e+01 : f32
    %41 = vector.broadcast %cst_36 : f32 to vector<8x1xf32>
    %42 = arith.divf %40, %41 : vector<8x1xf32>
    %43 = vector.broadcast %42 : vector<8x1xf32> to vector<8x32xf32>
    %44 = arith.subf %32, %43 : vector<8x32xf32>
    %45 = arith.mulf %44, %44 : vector<8x32xf32>
    %cst_37 = arith.constant dense<0.000000e+00> : vector<8xf32>
    %46 = vector.multi_reduction <add>, %45, %cst_37 [1] : vector<8x32xf32> to vector<8xf32>
    %47 = vector.shape_cast %46 : vector<8xf32> to vector<8x1xf32>
    %cst_38 = arith.constant 3.200000e+01 : f32
    %48 = vector.broadcast %cst_38 : f32 to vector<8x1xf32>
    %49 = arith.divf %47, %48 : vector<8x1xf32>
    %50 = vector.broadcast %42 : vector<8x1xf32> to vector<8x32xf32>
    %51 = arith.subf %32, %50 : vector<8x32xf32>
    %cst_39 = arith.constant 9.99999974E-6 : f32
    %52 = vector.broadcast %cst_39 : f32 to vector<8x1xf32>
    %53 = arith.addf %49, %52 : vector<8x1xf32>
    %54 = math.rsqrt %53 : vector<8x1xf32>
    %55 = vector.broadcast %54 : vector<8x1xf32> to vector<8x32xf32>
    %56 = arith.mulf %51, %55 : vector<8x32xf32>
    %57 = vector.broadcast %36 : vector<1x32xf32> to vector<8x32xf32>
    %58 = arith.mulf %56, %57 : vector<8x32xf32>
    %59 = vector.broadcast %38 : vector<1x32xf32> to vector<8x32xf32>
    %60 = arith.addf %58, %59 : vector<8x32xf32>
    %c0_40 = arith.constant 0 : index
    %c0_41 = arith.constant 0 : index
    %c0_42 = arith.constant 0 : index
    %61 = vector.load %arg14[%c0_40, %c0_41, %c0_42] : memref<2x32x32xbf16, #tpu.memory_space<vmem>>, vector<1x32x32xbf16>
    %62 = vector.shape_cast %61 : vector<1x32x32xbf16> to vector<32x32xbf16>
    %63 = arith.truncf %60 : vector<8x32xf32> to vector<8x32xbf16>
    %cst_43 = arith.constant dense<0.000000e+00> : vector<8x32xf32>
    %64 = tpu.matmul %63, %62, %cst_43 {dimension_numbers = #tpu.dot_dimension_numbers<[1], [0], [0], [1], [0, 0, 1, 1], [], []>} : vector<8x32xbf16>, vector<32x32xbf16>, vector<8x32xf32> -> vector<8x32xf32>
    %c0_44 = arith.constant 0 : index
    %c0_45 = arith.constant 0 : index
    %c0_46 = arith.constant 0 : index
    %65 = vector.load %arg15[%c0_44, %c0_45, %c0_46] : memref<2x1x32xf32, #tpu.memory_space<vmem>>, vector<1x1x32xf32>
    %66 = vector.shape_cast %65 : vector<1x1x32xf32> to vector<1x32xf32>
    %67 = vector.broadcast %66 : vector<1x32xf32> to vector<8x32xf32>
    %68 = arith.addf %64, %67 : vector<8x32xf32>
    %c0_47 = arith.constant 0 : index
    %c0_48 = arith.constant 0 : index
    %c0_49 = arith.constant 0 : index
    %69 = vector.load %arg16[%c0_47, %c0_48, %c0_49] : memref<2x32x32xbf16, #tpu.memory_space<vmem>>, vector<1x32x32xbf16>
    %70 = vector.shape_cast %69 : vector<1x32x32xbf16> to vector<32x32xbf16>
    %71 = arith.truncf %60 : vector<8x32xf32> to vector<8x32xbf16>
    %cst_50 = arith.constant dense<0.000000e+00> : vector<8x32xf32>
    %72 = tpu.matmul %71, %70, %cst_50 {dimension_numbers = #tpu.dot_dimension_numbers<[1], [0], [0], [1], [0, 0, 1, 1], [], []>} : vector<8x32xbf16>, vector<32x32xbf16>, vector<8x32xf32> -> vector<8x32xf32>
    %c0_51 = arith.constant 0 : index
    %c0_52 = arith.constant 0 : index
    %c0_53 = arith.constant 0 : index
    %73 = vector.load %arg17[%c0_51, %c0_52, %c0_53] : memref<2x1x32xf32, #tpu.memory_space<vmem>>, vector<1x1x32xf32>
    %74 = vector.shape_cast %73 : vector<1x1x32xf32> to vector<1x32xf32>
    %75 = vector.broadcast %74 : vector<1x32xf32> to vector<8x32xf32>
    %76 = arith.addf %72, %75 : vector<8x32xf32>
    %c0_54 = arith.constant 0 : index
    %c0_55 = arith.constant 0 : index
    %c0_56 = arith.constant 0 : index
    %77 = vector.load %arg18[%c0_54, %c0_55, %c0_56] : memref<2x32x32xbf16, #tpu.memory_space<vmem>>, vector<1x32x32xbf16>
    %78 = vector.shape_cast %77 : vector<1x32x32xbf16> to vector<32x32xbf16>
    %79 = arith.truncf %60 : vector<8x32xf32> to vector<8x32xbf16>
    %cst_57 = arith.constant dense<0.000000e+00> : vector<8x32xf32>
    %80 = tpu.matmul %79, %78, %cst_57 {dimension_numbers = #tpu.dot_dimension_numbers<[1], [0], [0], [1], [0, 0, 1, 1], [], []>} : vector<8x32xbf16>, vector<32x32xbf16>, vector<8x32xf32> -> vector<8x32xf32>
    %c0_58 = arith.constant 0 : index
    %c0_59 = arith.constant 0 : index
    %c0_60 = arith.constant 0 : index
    %81 = vector.load %arg19[%c0_58, %c0_59, %c0_60] : memref<2x1x32xf32, #tpu.memory_space<vmem>>, vector<1x1x32xf32>
    %82 = vector.shape_cast %81 : vector<1x1x32xf32> to vector<1x32xf32>
    %83 = vector.broadcast %82 : vector<1x32xf32> to vector<8x32xf32>
    %84 = arith.addf %80, %83 : vector<8x32xf32>
    %85 = tpu.concatenate %68, %68, %68, %68 in 0 : vector<8x32xf32>, vector<8x32xf32>, vector<8x32xf32>, vector<8x32xf32> -> vector<32x32xf32>
    %86 = tpu.concatenate %76, %76, %76, %76 in 0 : vector<8x32xf32>, vector<8x32xf32>, vector<8x32xf32>, vector<8x32xf32> -> vector<32x32xf32>
    %87 = arith.mulf %86, %33 : vector<32x32xf32>
    %88 = tpu.concatenate %84, %84, %84, %84 in 0 : vector<8x32xf32>, vector<8x32xf32>, vector<8x32xf32>, vector<8x32xf32> -> vector<32x32xf32>
    %89 = arith.mulf %88, %33 : vector<32x32xf32>
    %90 = arith.truncf %85 : vector<32x32xf32> to vector<32x32xbf16>
    %91 = arith.truncf %87 : vector<32x32xf32> to vector<32x32xbf16>
    %cst_61 = arith.constant dense<0.000000e+00> : vector<32x32xf32>
    %92 = tpu.matmul %90, %91, %cst_61 {dimension_numbers = #tpu.dot_dimension_numbers<[1], [1], [0], [0], [0, 0, 1, 0], [], []>} : vector<32x32xbf16>, vector<32x32xbf16>, vector<32x32xf32> -> vector<32x32xf32>
    %93 = arith.addf %92, %34 : vector<32x32xf32>
    %cst_62 = arith.constant dense<0xFF800000> : vector<32xf32>
    %94 = vector.multi_reduction <maximumf>, %93, %cst_62 [1] : vector<32x32xf32> to vector<32xf32>
    %95 = vector.shape_cast %94 : vector<32xf32> to vector<32x1xf32>
    %96 = vector.broadcast %95 : vector<32x1xf32> to vector<32x32xf32>
    %97 = arith.subf %93, %96 : vector<32x32xf32>
    %98 = math.exp %97 : vector<32x32xf32>
    %cst_63 = arith.constant dense<0.000000e+00> : vector<32xf32>
    %99 = vector.multi_reduction <add>, %98, %cst_63 [1] : vector<32x32xf32> to vector<32xf32>
    %100 = vector.shape_cast %99 : vector<32xf32> to vector<32x1xf32>
    %101 = tpu.reciprocal %100 {approx = true} : vector<32x1xf32> -> vector<32x1xf32>
    %102 = vector.broadcast %101 : vector<32x1xf32> to vector<32x32xf32>
    %103 = arith.mulf %98, %102 : vector<32x32xf32>
    %104 = arith.truncf %103 : vector<32x32xf32> to vector<32x32xbf16>
    %105 = arith.truncf %89 : vector<32x32xf32> to vector<32x32xbf16>
    %cst_64 = arith.constant dense<0.000000e+00> : vector<32x32xf32>
    %106 = tpu.matmul %104, %105, %cst_64 {dimension_numbers = #tpu.dot_dimension_numbers<[1], [0], [0], [1], [0, 0, 1, 1], [], []>} : vector<32x32xbf16>, vector<32x32xbf16>, vector<32x32xf32> -> vector<32x32xf32>
    %107 = vector.extract_strided_slice %106 {offsets = [0, 0], sizes = [8, 32], strides = [1, 1]} : vector<32x32xf32> to vector<8x32xf32>
    %108 = vector.extract_strided_slice %106 {offsets = [8, 0], sizes = [8, 32], strides = [1, 1]} : vector<32x32xf32> to vector<8x32xf32>
    %109 = arith.addf %107, %108 : vector<8x32xf32>
    %110 = vector.extract_strided_slice %106 {offsets = [16, 0], sizes = [8, 32], strides = [1, 1]} : vector<32x32xf32> to vector<8x32xf32>
    %111 = arith.addf %109, %110 : vector<8x32xf32>
    %112 = vector.extract_strided_slice %106 {offsets = [24, 0], sizes = [8, 32], strides = [1, 1]} : vector<32x32xf32> to vector<8x32xf32>
    %113 = arith.addf %111, %112 : vector<8x32xf32>
    %c0_65 = arith.constant 0 : index
    %c0_66 = arith.constant 0 : index
    %c0_67 = arith.constant 0 : index
    %114 = vector.load %arg20[%c0_65, %c0_66, %c0_67] : memref<2x32x32xbf16, #tpu.memory_space<vmem>>, vector<1x32x32xbf16>
    %115 = vector.shape_cast %114 : vector<1x32x32xbf16> to vector<32x32xbf16>
    %116 = arith.truncf %113 : vector<8x32xf32> to vector<8x32xbf16>
    %cst_68 = arith.constant dense<0.000000e+00> : vector<8x32xf32>
    %117 = tpu.matmul %116, %115, %cst_68 {dimension_numbers = #tpu.dot_dimension_numbers<[1], [0], [0], [1], [0, 0, 1, 1], [], []>} : vector<8x32xbf16>, vector<32x32xbf16>, vector<8x32xf32> -> vector<8x32xf32>
    %118 = arith.addf %32, %117 : vector<8x32xf32>
    %c0_69 = arith.constant 0 : index
    %c0_70 = arith.constant 0 : index
    %c0_71 = arith.constant 0 : index
    %119 = vector.load %arg21[%c0_69, %c0_70, %c0_71] : memref<2x1x32xf32, #tpu.memory_space<vmem>>, vector<1x1x32xf32>
    %120 = vector.shape_cast %119 : vector<1x1x32xf32> to vector<1x32xf32>
    %121 = vector.broadcast %120 : vector<1x32xf32> to vector<8x32xf32>
    %122 = arith.addf %118, %121 : vector<8x32xf32>
    %c0_72 = arith.constant 0 : index
    %c0_73 = arith.constant 0 : index
    %c0_74 = arith.constant 0 : index
    %123 = vector.load %arg22[%c0_72, %c0_73, %c0_74] : memref<2x1x32xf32, #tpu.memory_space<vmem>>, vector<1x1x32xf32>
    %124 = vector.shape_cast %123 : vector<1x1x32xf32> to vector<1x32xf32>
    %c0_75 = arith.constant 0 : index
    %c0_76 = arith.constant 0 : index
    %c0_77 = arith.constant 0 : index
    %125 = vector.load %arg23[%c0_75, %c0_76, %c0_77] : memref<2x1x32xf32, #tpu.memory_space<vmem>>, vector<1x1x32xf32>
    %126 = vector.shape_cast %125 : vector<1x1x32xf32> to vector<1x32xf32>
    %cst_78 = arith.constant dense<0.000000e+00> : vector<8xf32>
    %127 = vector.multi_reduction <add>, %122, %cst_78 [1] : vector<8x32xf32> to vector<8xf32>
    %128 = vector.shape_cast %127 : vector<8xf32> to vector<8x1xf32>
    %cst_79 = arith.constant 3.200000e+01 : f32
    %129 = vector.broadcast %cst_79 : f32 to vector<8x1xf32>
    %130 = arith.divf %128, %129 : vector<8x1xf32>
    %131 = vector.broadcast %130 : vector<8x1xf32> to vector<8x32xf32>
    %132 = arith.subf %122, %131 : vector<8x32xf32>
    %133 = arith.mulf %132, %132 : vector<8x32xf32>
    %cst_80 = arith.constant dense<0.000000e+00> : vector<8xf32>
    %134 = vector.multi_reduction <add>, %133, %cst_80 [1] : vector<8x32xf32> to vector<8xf32>
    %135 = vector.shape_cast %134 : vector<8xf32> to vector<8x1xf32>
    %cst_81 = arith.constant 3.200000e+01 : f32
    %136 = vector.broadcast %cst_81 : f32 to vector<8x1xf32>
    %137 = arith.divf %135, %136 : vector<8x1xf32>
    %138 = vector.broadcast %130 : vector<8x1xf32> to vector<8x32xf32>
    %139 = arith.subf %122, %138 : vector<8x32xf32>
    %cst_82 = arith.constant 9.99999974E-6 : f32
    %140 = vector.broadcast %cst_82 : f32 to vector<8x1xf32>
    %141 = arith.addf %137, %140 : vector<8x1xf32>
    %142 = math.rsqrt %141 : vector<8x1xf32>
    %143 = vector.broadcast %142 : vector<8x1xf32> to vector<8x32xf32>
    %144 = arith.mulf %139, %143 : vector<8x32xf32>
    %145 = vector.broadcast %124 : vector<1x32xf32> to vector<8x32xf32>
    %146 = arith.mulf %144, %145 : vector<8x32xf32>
    %147 = vector.broadcast %126 : vector<1x32xf32> to vector<8x32xf32>
    %148 = arith.addf %146, %147 : vector<8x32xf32>
    %c0_83 = arith.constant 0 : index
    %c0_84 = arith.constant 0 : index
    %c0_85 = arith.constant 0 : index
    %149 = vector.load %arg24[%c0_83, %c0_84, %c0_85] : memref<2x32x128xbf16, #tpu.memory_space<vmem>>, vector<1x32x128xbf16>
    %150 = vector.shape_cast %149 : vector<1x32x128xbf16> to vector<32x128xbf16>
    %151 = arith.truncf %148 : vector<8x32xf32> to vector<8x32xbf16>
    %cst_86 = arith.constant dense<0.000000e+00> : vector<8x128xf32>
    %152 = tpu.matmul %151, %150, %cst_86 {dimension_numbers = #tpu.dot_dimension_numbers<[1], [0], [0], [1], [0, 0, 1, 1], [], []>} : vector<8x32xbf16>, vector<32x128xbf16>, vector<8x128xf32> -> vector<8x128xf32>
    %c0_87 = arith.constant 0 : index
    %c0_88 = arith.constant 0 : index
    %c0_89 = arith.constant 0 : index
    %153 = vector.load %arg25[%c0_87, %c0_88, %c0_89] : memref<2x1x128xf32, #tpu.memory_space<vmem>>, vector<1x1x128xf32>
    %154 = vector.shape_cast %153 : vector<1x1x128xf32> to vector<1x128xf32>
    %155 = vector.broadcast %154 : vector<1x128xf32> to vector<8x128xf32>
    %156 = arith.addf %152, %155 : vector<8x128xf32>
    %157 = arith.mulf %156, %156 : vector<8x128xf32>
    %158 = arith.mulf %156, %157 : vector<8x128xf32>
    %cst_90 = arith.constant 4.471500e-02 : f32
    %159 = vector.broadcast %cst_90 : f32 to vector<8x128xf32>
    %160 = arith.mulf %159, %158 : vector<8x128xf32>
    %161 = arith.addf %156, %160 : vector<8x128xf32>
    %cst_91 = arith.constant 0.797884583 : f32
    %162 = vector.broadcast %cst_91 : f32 to vector<8x128xf32>
    %163 = arith.mulf %162, %161 : vector<8x128xf32>
    %164 = math.tanh %163 : vector<8x128xf32>
    %cst_92 = arith.constant 1.000000e+00 : f32
    %165 = vector.broadcast %cst_92 : f32 to vector<8x128xf32>
    %166 = arith.addf %165, %164 : vector<8x128xf32>
    %cst_93 = arith.constant 5.000000e-01 : f32
    %167 = vector.broadcast %cst_93 : f32 to vector<8x128xf32>
    %168 = arith.mulf %167, %166 : vector<8x128xf32>
    %169 = arith.mulf %156, %168 : vector<8x128xf32>
    %c0_94 = arith.constant 0 : index
    %c0_95 = arith.constant 0 : index
    %c0_96 = arith.constant 0 : index
    %170 = vector.load %arg26[%c0_94, %c0_95, %c0_96] : memref<2x128x32xbf16, #tpu.memory_space<vmem>>, vector<1x128x32xbf16>
    %171 = vector.shape_cast %170 : vector<1x128x32xbf16> to vector<128x32xbf16>
    %172 = arith.truncf %169 : vector<8x128xf32> to vector<8x128xbf16>
    %cst_97 = arith.constant dense<0.000000e+00> : vector<8x32xf32>
    %173 = tpu.matmul %172, %171, %cst_97 {dimension_numbers = #tpu.dot_dimension_numbers<[1], [0], [0], [1], [0, 0, 1, 1], [], []>} : vector<8x128xbf16>, vector<128x32xbf16>, vector<8x32xf32> -> vector<8x32xf32>
    %174 = arith.addf %122, %173 : vector<8x32xf32>
    %c0_98 = arith.constant 0 : index
    %c0_99 = arith.constant 0 : index
    %c0_100 = arith.constant 0 : index
    %175 = vector.load %arg27[%c0_98, %c0_99, %c0_100] : memref<2x1x32xf32, #tpu.memory_space<vmem>>, vector<1x1x32xf32>
    %176 = vector.shape_cast %175 : vector<1x1x32xf32> to vector<1x32xf32>
    %177 = vector.broadcast %176 : vector<1x32xf32> to vector<8x32xf32>
    %178 = arith.addf %174, %177 : vector<8x32xf32>
    %c1 = arith.constant 1 : index
    %c0_101 = arith.constant 0 : index
    %c0_102 = arith.constant 0 : index
    %179 = vector.load %arg12[%c1, %c0_101, %c0_102] : memref<2x1x32xf32, #tpu.memory_space<vmem>>, vector<1x1x32xf32>
    %180 = vector.shape_cast %179 : vector<1x1x32xf32> to vector<1x32xf32>
    %c1_103 = arith.constant 1 : index
    %c0_104 = arith.constant 0 : index
    %c0_105 = arith.constant 0 : index
    %181 = vector.load %arg13[%c1_103, %c0_104, %c0_105] : memref<2x1x32xf32, #tpu.memory_space<vmem>>, vector<1x1x32xf32>
    %182 = vector.shape_cast %181 : vector<1x1x32xf32> to vector<1x32xf32>
    %cst_106 = arith.constant dense<0.000000e+00> : vector<8xf32>
    %183 = vector.multi_reduction <add>, %178, %cst_106 [1] : vector<8x32xf32> to vector<8xf32>
    %184 = vector.shape_cast %183 : vector<8xf32> to vector<8x1xf32>
    %cst_107 = arith.constant 3.200000e+01 : f32
    %185 = vector.broadcast %cst_107 : f32 to vector<8x1xf32>
    %186 = arith.divf %184, %185 : vector<8x1xf32>
    %187 = vector.broadcast %186 : vector<8x1xf32> to vector<8x32xf32>
    %188 = arith.subf %178, %187 : vector<8x32xf32>
    %189 = arith.mulf %188, %188 : vector<8x32xf32>
    %cst_108 = arith.constant dense<0.000000e+00> : vector<8xf32>
    %190 = vector.multi_reduction <add>, %189, %cst_108 [1] : vector<8x32xf32> to vector<8xf32>
    %191 = vector.shape_cast %190 : vector<8xf32> to vector<8x1xf32>
    %cst_109 = arith.constant 3.200000e+01 : f32
    %192 = vector.broadcast %cst_109 : f32 to vector<8x1xf32>
    %193 = arith.divf %191, %192 : vector<8x1xf32>
    %194 = vector.broadcast %186 : vector<8x1xf32> to vector<8x32xf32>
    %195 = arith.subf %178, %194 : vector<8x32xf32>
    %cst_110 = arith.constant 9.99999974E-6 : f32
    %196 = vector.broadcast %cst_110 : f32 to vector<8x1xf32>
    %197 = arith.addf %193, %196 : vector<8x1xf32>
    %198 = math.rsqrt %197 : vector<8x1xf32>
    %199 = vector.broadcast %198 : vector<8x1xf32> to vector<8x32xf32>
    %200 = arith.mulf %195, %199 : vector<8x32xf32>
    %201 = vector.broadcast %180 : vector<1x32xf32> to vector<8x32xf32>
    %202 = arith.mulf %200, %201 : vector<8x32xf32>
    %203 = vector.broadcast %182 : vector<1x32xf32> to vector<8x32xf32>
    %204 = arith.addf %202, %203 : vector<8x32xf32>
    %c1_111 = arith.constant 1 : index
    %c0_112 = arith.constant 0 : index
    %c0_113 = arith.constant 0 : index
    %205 = vector.load %arg14[%c1_111, %c0_112, %c0_113] : memref<2x32x32xbf16, #tpu.memory_space<vmem>>, vector<1x32x32xbf16>
    %206 = vector.shape_cast %205 : vector<1x32x32xbf16> to vector<32x32xbf16>
    %207 = arith.truncf %204 : vector<8x32xf32> to vector<8x32xbf16>
    %cst_114 = arith.constant dense<0.000000e+00> : vector<8x32xf32>
    %208 = tpu.matmul %207, %206, %cst_114 {dimension_numbers = #tpu.dot_dimension_numbers<[1], [0], [0], [1], [0, 0, 1, 1], [], []>} : vector<8x32xbf16>, vector<32x32xbf16>, vector<8x32xf32> -> vector<8x32xf32>
    %c1_115 = arith.constant 1 : index
    %c0_116 = arith.constant 0 : index
    %c0_117 = arith.constant 0 : index
    %209 = vector.load %arg15[%c1_115, %c0_116, %c0_117] : memref<2x1x32xf32, #tpu.memory_space<vmem>>, vector<1x1x32xf32>
    %210 = vector.shape_cast %209 : vector<1x1x32xf32> to vector<1x32xf32>
    %211 = vector.broadcast %210 : vector<1x32xf32> to vector<8x32xf32>
    %212 = arith.addf %208, %211 : vector<8x32xf32>
    %c1_118 = arith.constant 1 : index
    %c0_119 = arith.constant 0 : index
    %c0_120 = arith.constant 0 : index
    %213 = vector.load %arg16[%c1_118, %c0_119, %c0_120] : memref<2x32x32xbf16, #tpu.memory_space<vmem>>, vector<1x32x32xbf16>
    %214 = vector.shape_cast %213 : vector<1x32x32xbf16> to vector<32x32xbf16>
    %215 = arith.truncf %204 : vector<8x32xf32> to vector<8x32xbf16>
    %cst_121 = arith.constant dense<0.000000e+00> : vector<8x32xf32>
    %216 = tpu.matmul %215, %214, %cst_121 {dimension_numbers = #tpu.dot_dimension_numbers<[1], [0], [0], [1], [0, 0, 1, 1], [], []>} : vector<8x32xbf16>, vector<32x32xbf16>, vector<8x32xf32> -> vector<8x32xf32>
    %c1_122 = arith.constant 1 : index
    %c0_123 = arith.constant 0 : index
    %c0_124 = arith.constant 0 : index
    %217 = vector.load %arg17[%c1_122, %c0_123, %c0_124] : memref<2x1x32xf32, #tpu.memory_space<vmem>>, vector<1x1x32xf32>
    %218 = vector.shape_cast %217 : vector<1x1x32xf32> to vector<1x32xf32>
    %219 = vector.broadcast %218 : vector<1x32xf32> to vector<8x32xf32>
    %220 = arith.addf %216, %219 : vector<8x32xf32>
    %c1_125 = arith.constant 1 : index
    %c0_126 = arith.constant 0 : index
    %c0_127 = arith.constant 0 : index
    %221 = vector.load %arg18[%c1_125, %c0_126, %c0_127] : memref<2x32x32xbf16, #tpu.memory_space<vmem>>, vector<1x32x32xbf16>
    %222 = vector.shape_cast %221 : vector<1x32x32xbf16> to vector<32x32xbf16>
    %223 = arith.truncf %204 : vector<8x32xf32> to vector<8x32xbf16>
    %cst_128 = arith.constant dense<0.000000e+00> : vector<8x32xf32>
    %224 = tpu.matmul %223, %222, %cst_128 {dimension_numbers = #tpu.dot_dimension_numbers<[1], [0], [0], [1], [0, 0, 1, 1], [], []>} : vector<8x32xbf16>, vector<32x32xbf16>, vector<8x32xf32> -> vector<8x32xf32>
    %c1_129 = arith.constant 1 : index
    %c0_130 = arith.constant 0 : index
    %c0_131 = arith.constant 0 : index
    %225 = vector.load %arg19[%c1_129, %c0_130, %c0_131] : memref<2x1x32xf32, #tpu.memory_space<vmem>>, vector<1x1x32xf32>
    %226 = vector.shape_cast %225 : vector<1x1x32xf32> to vector<1x32xf32>
    %227 = vector.broadcast %226 : vector<1x32xf32> to vector<8x32xf32>
    %228 = arith.addf %224, %227 : vector<8x32xf32>
    %229 = tpu.concatenate %212, %212, %212, %212 in 0 : vector<8x32xf32>, vector<8x32xf32>, vector<8x32xf32>, vector<8x32xf32> -> vector<32x32xf32>
    %230 = tpu.concatenate %220, %220, %220, %220 in 0 : vector<8x32xf32>, vector<8x32xf32>, vector<8x32xf32>, vector<8x32xf32> -> vector<32x32xf32>
    %231 = arith.mulf %230, %33 : vector<32x32xf32>
    %232 = tpu.concatenate %228, %228, %228, %228 in 0 : vector<8x32xf32>, vector<8x32xf32>, vector<8x32xf32>, vector<8x32xf32> -> vector<32x32xf32>
    %233 = arith.mulf %232, %33 : vector<32x32xf32>
    %234 = arith.truncf %229 : vector<32x32xf32> to vector<32x32xbf16>
    %235 = arith.truncf %231 : vector<32x32xf32> to vector<32x32xbf16>
    %cst_132 = arith.constant dense<0.000000e+00> : vector<32x32xf32>
    %236 = tpu.matmul %234, %235, %cst_132 {dimension_numbers = #tpu.dot_dimension_numbers<[1], [1], [0], [0], [0, 0, 1, 0], [], []>} : vector<32x32xbf16>, vector<32x32xbf16>, vector<32x32xf32> -> vector<32x32xf32>
    %237 = arith.addf %236, %34 : vector<32x32xf32>
    %cst_133 = arith.constant dense<0xFF800000> : vector<32xf32>
    %238 = vector.multi_reduction <maximumf>, %237, %cst_133 [1] : vector<32x32xf32> to vector<32xf32>
    %239 = vector.shape_cast %238 : vector<32xf32> to vector<32x1xf32>
    %240 = vector.broadcast %239 : vector<32x1xf32> to vector<32x32xf32>
    %241 = arith.subf %237, %240 : vector<32x32xf32>
    %242 = math.exp %241 : vector<32x32xf32>
    %cst_134 = arith.constant dense<0.000000e+00> : vector<32xf32>
    %243 = vector.multi_reduction <add>, %242, %cst_134 [1] : vector<32x32xf32> to vector<32xf32>
    %244 = vector.shape_cast %243 : vector<32xf32> to vector<32x1xf32>
    %245 = tpu.reciprocal %244 {approx = true} : vector<32x1xf32> -> vector<32x1xf32>
    %246 = vector.broadcast %245 : vector<32x1xf32> to vector<32x32xf32>
    %247 = arith.mulf %242, %246 : vector<32x32xf32>
    %248 = arith.truncf %247 : vector<32x32xf32> to vector<32x32xbf16>
    %249 = arith.truncf %233 : vector<32x32xf32> to vector<32x32xbf16>
    %cst_135 = arith.constant dense<0.000000e+00> : vector<32x32xf32>
    %250 = tpu.matmul %248, %249, %cst_135 {dimension_numbers = #tpu.dot_dimension_numbers<[1], [0], [0], [1], [0, 0, 1, 1], [], []>} : vector<32x32xbf16>, vector<32x32xbf16>, vector<32x32xf32> -> vector<32x32xf32>
    %251 = vector.extract_strided_slice %250 {offsets = [0, 0], sizes = [8, 32], strides = [1, 1]} : vector<32x32xf32> to vector<8x32xf32>
    %252 = vector.extract_strided_slice %250 {offsets = [8, 0], sizes = [8, 32], strides = [1, 1]} : vector<32x32xf32> to vector<8x32xf32>
    %253 = arith.addf %251, %252 : vector<8x32xf32>
    %254 = vector.extract_strided_slice %250 {offsets = [16, 0], sizes = [8, 32], strides = [1, 1]} : vector<32x32xf32> to vector<8x32xf32>
    %255 = arith.addf %253, %254 : vector<8x32xf32>
    %256 = vector.extract_strided_slice %250 {offsets = [24, 0], sizes = [8, 32], strides = [1, 1]} : vector<32x32xf32> to vector<8x32xf32>
    %257 = arith.addf %255, %256 : vector<8x32xf32>
    %c1_136 = arith.constant 1 : index
    %c0_137 = arith.constant 0 : index
    %c0_138 = arith.constant 0 : index
    %258 = vector.load %arg20[%c1_136, %c0_137, %c0_138] : memref<2x32x32xbf16, #tpu.memory_space<vmem>>, vector<1x32x32xbf16>
    %259 = vector.shape_cast %258 : vector<1x32x32xbf16> to vector<32x32xbf16>
    %260 = arith.truncf %257 : vector<8x32xf32> to vector<8x32xbf16>
    %cst_139 = arith.constant dense<0.000000e+00> : vector<8x32xf32>
    %261 = tpu.matmul %260, %259, %cst_139 {dimension_numbers = #tpu.dot_dimension_numbers<[1], [0], [0], [1], [0, 0, 1, 1], [], []>} : vector<8x32xbf16>, vector<32x32xbf16>, vector<8x32xf32> -> vector<8x32xf32>
    %262 = arith.addf %178, %261 : vector<8x32xf32>
    %c1_140 = arith.constant 1 : index
    %c0_141 = arith.constant 0 : index
    %c0_142 = arith.constant 0 : index
    %263 = vector.load %arg21[%c1_140, %c0_141, %c0_142] : memref<2x1x32xf32, #tpu.memory_space<vmem>>, vector<1x1x32xf32>
    %264 = vector.shape_cast %263 : vector<1x1x32xf32> to vector<1x32xf32>
    %265 = vector.broadcast %264 : vector<1x32xf32> to vector<8x32xf32>
    %266 = arith.addf %262, %265 : vector<8x32xf32>
    %c1_143 = arith.constant 1 : index
    %c0_144 = arith.constant 0 : index
    %c0_145 = arith.constant 0 : index
    %267 = vector.load %arg22[%c1_143, %c0_144, %c0_145] : memref<2x1x32xf32, #tpu.memory_space<vmem>>, vector<1x1x32xf32>
    %268 = vector.shape_cast %267 : vector<1x1x32xf32> to vector<1x32xf32>
    %c1_146 = arith.constant 1 : index
    %c0_147 = arith.constant 0 : index
    %c0_148 = arith.constant 0 : index
    %269 = vector.load %arg23[%c1_146, %c0_147, %c0_148] : memref<2x1x32xf32, #tpu.memory_space<vmem>>, vector<1x1x32xf32>
    %270 = vector.shape_cast %269 : vector<1x1x32xf32> to vector<1x32xf32>
    %cst_149 = arith.constant dense<0.000000e+00> : vector<8xf32>
    %271 = vector.multi_reduction <add>, %266, %cst_149 [1] : vector<8x32xf32> to vector<8xf32>
    %272 = vector.shape_cast %271 : vector<8xf32> to vector<8x1xf32>
    %cst_150 = arith.constant 3.200000e+01 : f32
    %273 = vector.broadcast %cst_150 : f32 to vector<8x1xf32>
    %274 = arith.divf %272, %273 : vector<8x1xf32>
    %275 = vector.broadcast %274 : vector<8x1xf32> to vector<8x32xf32>
    %276 = arith.subf %266, %275 : vector<8x32xf32>
    %277 = arith.mulf %276, %276 : vector<8x32xf32>
    %cst_151 = arith.constant dense<0.000000e+00> : vector<8xf32>
    %278 = vector.multi_reduction <add>, %277, %cst_151 [1] : vector<8x32xf32> to vector<8xf32>
    %279 = vector.shape_cast %278 : vector<8xf32> to vector<8x1xf32>
    %cst_152 = arith.constant 3.200000e+01 : f32
    %280 = vector.broadcast %cst_152 : f32 to vector<8x1xf32>
    %281 = arith.divf %279, %280 : vector<8x1xf32>
    %282 = vector.broadcast %274 : vector<8x1xf32> to vector<8x32xf32>
    %283 = arith.subf %266, %282 : vector<8x32xf32>
    %cst_153 = arith.constant 9.99999974E-6 : f32
    %284 = vector.broadcast %cst_153 : f32 to vector<8x1xf32>
    %285 = arith.addf %281, %284 : vector<8x1xf32>
    %286 = math.rsqrt %285 : vector<8x1xf32>
    %287 = vector.broadcast %286 : vector<8x1xf32> to vector<8x32xf32>
    %288 = arith.mulf %283, %287 : vector<8x32xf32>
    %289 = vector.broadcast %268 : vector<1x32xf32> to vector<8x32xf32>
    %290 = arith.mulf %288, %289 : vector<8x32xf32>
    %291 = vector.broadcast %270 : vector<1x32xf32> to vector<8x32xf32>
    %292 = arith.addf %290, %291 : vector<8x32xf32>
    %c1_154 = arith.constant 1 : index
    %c0_155 = arith.constant 0 : index
    %c0_156 = arith.constant 0 : index
    %293 = vector.load %arg24[%c1_154, %c0_155, %c0_156] : memref<2x32x128xbf16, #tpu.memory_space<vmem>>, vector<1x32x128xbf16>
    %294 = vector.shape_cast %293 : vector<1x32x128xbf16> to vector<32x128xbf16>
    %295 = arith.truncf %292 : vector<8x32xf32> to vector<8x32xbf16>
    %cst_157 = arith.constant dense<0.000000e+00> : vector<8x128xf32>
    %296 = tpu.matmul %295, %294, %cst_157 {dimension_numbers = #tpu.dot_dimension_numbers<[1], [0], [0], [1], [0, 0, 1, 1], [], []>} : vector<8x32xbf16>, vector<32x128xbf16>, vector<8x128xf32> -> vector<8x128xf32>
    %c1_158 = arith.constant 1 : index
    %c0_159 = arith.constant 0 : index
    %c0_160 = arith.constant 0 : index
    %297 = vector.load %arg25[%c1_158, %c0_159, %c0_160] : memref<2x1x128xf32, #tpu.memory_space<vmem>>, vector<1x1x128xf32>
    %298 = vector.shape_cast %297 : vector<1x1x128xf32> to vector<1x128xf32>
    %299 = vector.broadcast %298 : vector<1x128xf32> to vector<8x128xf32>
    %300 = arith.addf %296, %299 : vector<8x128xf32>
    %301 = arith.mulf %300, %300 : vector<8x128xf32>
    %302 = arith.mulf %300, %301 : vector<8x128xf32>
    %cst_161 = arith.constant 4.471500e-02 : f32
    %303 = vector.broadcast %cst_161 : f32 to vector<8x128xf32>
    %304 = arith.mulf %303, %302 : vector<8x128xf32>
    %305 = arith.addf %300, %304 : vector<8x128xf32>
    %cst_162 = arith.constant 0.797884583 : f32
    %306 = vector.broadcast %cst_162 : f32 to vector<8x128xf32>
    %307 = arith.mulf %306, %305 : vector<8x128xf32>
    %308 = math.tanh %307 : vector<8x128xf32>
    %cst_163 = arith.constant 1.000000e+00 : f32
    %309 = vector.broadcast %cst_163 : f32 to vector<8x128xf32>
    %310 = arith.addf %309, %308 : vector<8x128xf32>
    %cst_164 = arith.constant 5.000000e-01 : f32
    %311 = vector.broadcast %cst_164 : f32 to vector<8x128xf32>
    %312 = arith.mulf %311, %310 : vector<8x128xf32>
    %313 = arith.mulf %300, %312 : vector<8x128xf32>
    %c1_165 = arith.constant 1 : index
    %c0_166 = arith.constant 0 : index
    %c0_167 = arith.constant 0 : index
    %314 = vector.load %arg26[%c1_165, %c0_166, %c0_167] : memref<2x128x32xbf16, #tpu.memory_space<vmem>>, vector<1x128x32xbf16>
    %315 = vector.shape_cast %314 : vector<1x128x32xbf16> to vector<128x32xbf16>
    %316 = arith.truncf %313 : vector<8x128xf32> to vector<8x128xbf16>
    %cst_168 = arith.constant dense<0.000000e+00> : vector<8x32xf32>
    %317 = tpu.matmul %316, %315, %cst_168 {dimension_numbers = #tpu.dot_dimension_numbers<[1], [0], [0], [1], [0, 0, 1, 1], [], []>} : vector<8x128xbf16>, vector<128x32xbf16>, vector<8x32xf32> -> vector<8x32xf32>
    %318 = arith.addf %266, %317 : vector<8x32xf32>
    %c1_169 = arith.constant 1 : index
    %c0_170 = arith.constant 0 : index
    %c0_171 = arith.constant 0 : index
    %319 = vector.load %arg27[%c1_169, %c0_170, %c0_171] : memref<2x1x32xf32, #tpu.memory_space<vmem>>, vector<1x1x32xf32>
    %320 = vector.shape_cast %319 : vector<1x1x32xf32> to vector<1x32xf32>
    %321 = vector.broadcast %320 : vector<1x32xf32> to vector<8x32xf32>
    %322 = arith.addf %318, %321 : vector<8x32xf32>
    %c0_172 = arith.constant 0 : index
    %c0_173 = arith.constant 0 : index
    %323 = vector.load %arg28[%c0_172, %c0_173] : memref<1x32xf32, #tpu.memory_space<vmem>>, vector<1x32xf32>
    %c0_174 = arith.constant 0 : index
    %c0_175 = arith.constant 0 : index
    %324 = vector.load %arg29[%c0_174, %c0_175] : memref<1x32xf32, #tpu.memory_space<vmem>>, vector<1x32xf32>
    %cst_176 = arith.constant dense<0.000000e+00> : vector<8xf32>
    %325 = vector.multi_reduction <add>, %322, %cst_176 [1] : vector<8x32xf32> to vector<8xf32>
    %326 = vector.shape_cast %325 : vector<8xf32> to vector<8x1xf32>
    %cst_177 = arith.constant 3.200000e+01 : f32
    %327 = vector.broadcast %cst_177 : f32 to vector<8x1xf32>
    %328 = arith.divf %326, %327 : vector<8x1xf32>
    %329 = vector.broadcast %328 : vector<8x1xf32> to vector<8x32xf32>
    %330 = arith.subf %322, %329 : vector<8x32xf32>
    %331 = arith.mulf %330, %330 : vector<8x32xf32>
    %cst_178 = arith.constant dense<0.000000e+00> : vector<8xf32>
    %332 = vector.multi_reduction <add>, %331, %cst_178 [1] : vector<8x32xf32> to vector<8xf32>
    %333 = vector.shape_cast %332 : vector<8xf32> to vector<8x1xf32>
    %cst_179 = arith.constant 3.200000e+01 : f32
    %334 = vector.broadcast %cst_179 : f32 to vector<8x1xf32>
    %335 = arith.divf %333, %334 : vector<8x1xf32>
    %336 = vector.broadcast %328 : vector<8x1xf32> to vector<8x32xf32>
    %337 = arith.subf %322, %336 : vector<8x32xf32>
    %cst_180 = arith.constant 9.99999974E-6 : f32
    %338 = vector.broadcast %cst_180 : f32 to vector<8x1xf32>
    %339 = arith.addf %335, %338 : vector<8x1xf32>
    %340 = math.rsqrt %339 : vector<8x1xf32>
    %341 = vector.broadcast %340 : vector<8x1xf32> to vector<8x32xf32>
    %342 = arith.mulf %337, %341 : vector<8x32xf32>
    %343 = vector.broadcast %323 : vector<1x32xf32> to vector<8x32xf32>
    %344 = arith.mulf %342, %343 : vector<8x32xf32>
    %345 = vector.broadcast %324 : vector<1x32xf32> to vector<8x32xf32>
    %346 = arith.addf %344, %345 : vector<8x32xf32>
    %c0_181 = arith.constant 0 : index
    %c0_182 = arith.constant 0 : index
    %347 = vector.load %arg30[%c0_181, %c0_182] : memref<32x128xbf16, #tpu.memory_space<vmem>>, vector<32x128xbf16>
    %348 = arith.truncf %346 : vector<8x32xf32> to vector<8x32xbf16>
    %cst_183 = arith.constant dense<0.000000e+00> : vector<8x128xf32>
    %349 = tpu.matmul %348, %347, %cst_183 {dimension_numbers = #tpu.dot_dimension_numbers<[1], [0], [0], [1], [0, 0, 1, 1], [], []>} : vector<8x32xbf16>, vector<32x128xbf16>, vector<8x128xf32> -> vector<8x128xf32>
    %c0_184 = arith.constant 0 : index
    %c0_185 = arith.constant 0 : index
    %350 = vector.load %arg31[%c0_184, %c0_185] : memref<1x128xf32, #tpu.memory_space<vmem>>, vector<1x128xf32>
    %351 = vector.broadcast %350 : vector<1x128xf32> to vector<8x128xf32>
    %352 = arith.addf %349, %351 : vector<8x128xf32>
    %c0_186 = arith.constant 0 : index
    %c0_187 = arith.constant 0 : index
    %353 = vector.load %arg32[%c0_186, %c0_187] : memref<8x128xf32, #tpu.memory_space<vmem>>, vector<8x128xf32>
    tpu.vector_store %arg32[%c0_186, %c0_187], %352 {strides = array<i32>} : memref<8x128xf32, #tpu.memory_space<vmem>>, vector<8x128xf32>,
    return
  }
}

</mosaic_0001>

<bundles_post_ra>
// kernel: track_classifier_forward.1
= control target key start
LH: loop header
LB: loop body
LE: loop exit
PB: predicated region body
PF: predicated region fallthrough
CT: control target
= control target key end

     0   :  { %s4217_s6 = smov 1   ;;  %s4218_s10 = smov 2   ;;  %s4803_s0 = inlined_call_operand.smem [shape: u32[33], index: -1, kind: input, shape index: {}] }
   0x1   :  { %s4274_s5 = sld [smem:[%s4803_s0]]   ;;  %s4219_s14 = smov 3  }
   0x2   :  { %s4279_s9 = sld [smem:[%s4803_s0 + %s4217_s6]]   ;;  %s4220_s18 = smov 4  }
   0x3   :  { %s4284_s13 = sld [smem:[%s4803_s0 + %s4218_s10]]   ;;  %s4221_s22 = smov 5  }
   0x4   :  { %s4289_s17 = sld [smem:[%s4803_s0 + %s4219_s14]]   ;;  %s4222_s26 = smov 6  }
   0x5   :  { %s4294_s21 = sld [smem:[%s4803_s0 + %s4220_s18]]   ;;  %s4223_s30 = smov 7  }
   0x6   :  { %s4299_s25 = sld [smem:[%s4803_s0 + %s4221_s22]]   ;;  %s4224_s4 = smov 8  }
   0x7   :  { %s4304_s29 = sld [smem:[%s4803_s0 + %s4222_s26]]   ;;  %s4225_s10 = smov 9  }
   0x8   :  { %s4309_s3 = sld [smem:[%s4803_s0 + %s4223_s30]]   ;;  %s4226_s15 = smov 10  }
   0x9   :  { %s4314_s8 = sld [smem:[%s4803_s0 + %s4224_s4]]   ;;  %s4227_s20 = smov 11  }
   0xa   :  { %s4319_s14 = sld [smem:[%s4803_s0 + %s4225_s10]]   ;;  %s4228_s26 = smov 12  }
   0xb   :  { %s4324_s19 = sld [smem:[%s4803_s0 + %s4226_s15]]   ;;  %s4229_s1 = smov 13  }
   0xc   :  { %s4329_s24 = sld [smem:[%s4803_s0 + %s4227_s20]]   ;;  %s4230_s7 = smov 14  }
   0xd   :  { %s4334_s30 = sld [smem:[%s4803_s0 + %s4228_s26]]   ;;  %s4231_s15 = smov 15  }
   0xe   :  { %s4339_s6 = sld [smem:[%s4803_s0 + %s4229_s1]]   ;;  %s4232_s22 = smov 16  }
   0xf   :  { %4816 = sst [smem:[#allocation24_spill]] %s4314_s8  ;;  %s4233_s28 = smov 17  }
  0x10   :  { %4817 = sst [smem:[#allocation25_spill]] %s4319_s14 }
  0x11   :  { %4818 = sst [smem:[#allocation26_spill]] %s4324_s19 }
  0x12   :  { %4819 = sst [smem:[#allocation27_spill]] %s4329_s24 }
  0x13   :  { %4820 = sst [smem:[#allocation28_spill]] %s4334_s30 }
  0x14   :  { %4821 = sst [smem:[#allocation29_spill]] %s4339_s6 }
  0x15   :  { %s4344_s12 = sld [smem:[%s4803_s0 + %s4230_s7]]   ;;  %s4234_s7 = smov 18  }
  0x16   :  { %s4349_s20 = sld [smem:[%s4803_s0 + %s4231_s15]]   ;;  %s4235_s15 = smov 19  }
  0x17   :  { %s4354_s27 = sld [smem:[%s4803_s0 + %s4232_s22]]   ;;  %s4236_s22 = smov 20  }
  0x18   :  { %s4359_s4 = sld [smem:[%s4803_s0 + %s4233_s28]]   ;;  %s4237_s28 = smov 21  }
  0x19   :  { %s4364_s24 = sld [smem:[%s4803_s0 + %s4234_s7]]   ;;  %s4238_s7 = smov 22  }
  0x1a   :  { %s4369_s19 = sld [smem:[%s4803_s0 + %s4235_s15]]   ;;  %s4239_s15 = smov 23  }
  0x1b   :  { %4822 = sst [smem:[#allocation30_spill]] %s4344_s12 }
  0x1c   :  { %s4379_s6 = sld [smem:[%s4803_s0 + %s4237_s28]]   ;;  %s4241_s28 = smov 25  }
  0x1d   :  { %4823 = sst [smem:[#allocation31_spill]] %s4354_s27 }
  0x1e   :  { %s4374_s27 = sld [smem:[%s4803_s0 + %s4236_s22]]   ;;  %s4240_s22 = smov 24  }
  0x1f   :  { %4824 = sst [smem:[#allocation32_spill]] %s4364_s24 }
  0x20   :  { %s4384_s24 = sld [smem:[%s4803_s0 + %s4238_s7]]   ;;  %s4242_s7 = smov 26  }
  0x21   :  { %s4389_s30 = sld [smem:[%s4803_s0 + %s4239_s15]]   ;;  %s4243_s15 = smov 27  }
  0x22   :  { %s4399_s12 = sld [smem:[%s4803_s0 + %s4241_s28]]   ;;  %s4245_s28 = smov 29  }
  0x23   :  { %s4419_s14 = sld [smem:[%s4803_s0 + %s4245_s28]]  }
  0x24   :  { %4825 = sst [smem:[#allocation33_spill]] %s4374_s27 }
  0x25   :  { %s4394_s27 = sld [smem:[%s4803_s0 + %s4240_s22]]   ;;  %s4244_s22 = smov 28  }
  0x26   :  { %4826 = sst [smem:[#allocation34_spill]] %s4384_s24 }
  0x27   :  { %4827 = sst [smem:[#allocation35_spill]] %s4389_s30 }
  0x28   :  { %s4404_s24 = sld [smem:[%s4803_s0 + %s4242_s7]]   ;;  %s4246_s7 = smov 30  }
  0x29   :  { %s4409_s30 = sld [smem:[%s4803_s0 + %s4243_s15]]   ;;  %s4247_s15 = smov 31  }
  0x2a   :  { %s4429_s8 = sld [smem:[%s4803_s0 + %s4247_s15]]  }
  0x2b   :  { %4828 = sst [smem:[#allocation36_spill]] %s4394_s27 }
  0x2c   :  { %s4414_s27 = sld [smem:[%s4803_s0 + %s4244_s22]]   ;;  %s4248_s22 = smov 32  }
  0x2e   :  { %4829 = sst [smem:[#allocation37_spill]] %s4404_s24 }
  0x2f   :  { %s4424_s24 = sld [smem:[%s4803_s0 + %s4246_s7]]  }
  0x32   :  { %4830 = sst [smem:[#allocation38_spill]] %s4414_s27 }
  0x33   :  { %s4434_s27 = sld [smem:[%s4803_s0 + %s4248_s22]]  }
  0x34   :  { %70 = vsyncpa [#allocation3], 0 }
  0x35   :  { %71 = vsyncpa [#allocation5], 0 }
  0x36   :  { %72 = vsyncpa [#allocation8], 0 }
  0x37   :  { %73 = vsyncpa [#allocation11], 0 }
  0x38   :  { %74 = vsyncpa [#allocation14], 0 }
  0x39   :  { %75 = vsyncpa [#allocation17], 0  ;;  %s4249_s28 = smov [#allocation4]   ;;  %s3985_s2 = scalar_lea.hbm %s4289_s17, 8192 }
  0x3a   :  { %s97_s1 = sshll.u32 %s4249_s28, 4  ;;  %p3986_p0 = scmp.ne.s32.totalorder %s4289_s17, %s3985_s2  ;;  %s98_s1 = int_to_ptr.vmem [resolvable:$true] %s97_s1 }
  0x3b   :  { %p3989_p1 = scmp.lt.u32.totalorder %s3985_s2, %s4289_s17 }
  0x3d   :  { %p3991_p2 = pnand %p3989_p1, %p3986_p0 }
  0x3f   :  { %3994 = shalt.err (!%p3991_p2)
}
  0x40   :  { %s3995_s7 = scalar_lea.vmem %s98_s1, 8192  ;;  %p4000_p4 = scmp.lt.s32.totalorder %s98_s1, %s98_s1 }
  0x41   :  { %p3996_p3 = scmp.ne.s32.totalorder %s98_s1, %s3995_s7  ;;  %p4001_p5 = scmp.lt.s32.totalorder %s3995_s7, %s3995_s7 }
  0x43   :  { %p4002_p6 = por %p4001_p5, %p4000_p4 }
  0x45   :  { %p4003_p7 = pnand %p4002_p6, %p3996_p3 }
  0x47   :  { %4006 = shalt.err (!%p4003_p7)
}
  0x48   :  { %s4250_s0 = smov 128   ;;  %s4251_s10 = smov 8  }
  0x49   :  { %103 = dma.hbm_to_vmem [thread:$0]  %s4289_s17, 8192, %s98_s1, [#allocation5], %s4250_s0, %s4250_s0, %s4251_s10  }
  0x4a   :  { %s4252_s11 = smov [#allocation7]   ;;  %s4253_s16 = smov [#allocation10]  }
  0x4b   :  { %s139_s15 = sshll.u32 %s4252_s11, 4  ;;  %s167_s18 = sshll.u32 %s4253_s16, 4  ;;  %s140_s15 = int_to_ptr.vmem [resolvable:$true] %s139_s15  ;;  %s168_s18 = int_to_ptr.vmem [resolvable:$true] %s167_s18 }
  0x4c   :  { %s4007_s22 = scalar_lea.hbm %s4349_s20, 32 }
  0x4d   :  { %p4008_p8 = scmp.ne.s32.totalorder %s4349_s20, %s4007_s22  ;;  %p4011_p9 = scmp.lt.u32.totalorder %s4007_s22, %s4349_s20 }
  0x4f   :  { %p4013_p10 = pnand %p4011_p9, %p4008_p8 }
  0x51   :  { %4016 = shalt.err (!%p4013_p10)
}
  0x52   :  { %s4017_s23 = scalar_lea.vmem %s140_s15, 32  ;;  %p4022_p12 = scmp.lt.s32.totalorder %s140_s15, %s140_s15 }
  0x53   :  { %p4018_p11 = scmp.ne.s32.totalorder %s140_s15, %s4017_s23  ;;  %p4023_p13 = scmp.lt.s32.totalorder %s4017_s23, %s4017_s23 }
  0x55   :  { %p4024_p0 = por %p4023_p13, %p4022_p12 }
  0x57   :  { %p4025_p1 = pnand %p4024_p0, %p4018_p11 }
  0x59   :  { %4028 = shalt.err (!%p4025_p1)
}
  0x5a   :  { %s4254_s26 = smov 16   ;;  %s4255_s17 = smov 1  }
  0x5b   :  { %145 = dma.hbm_to_vmem [thread:$0]  %s4349_s20, 32, %s140_s15, [#allocation8], %s4254_s26, %s4254_s26, %s4255_s17  }
  0x5c   :  { %s4029_s28 = scalar_lea.hbm %s4369_s19, 32 }
  0x5d   :  { %p4030_p2 = scmp.ne.s32.totalorder %s4369_s19, %s4029_s28  ;;  %p4033_p3 = scmp.lt.u32.totalorder %s4029_s28, %s4369_s19 }
  0x5f   :  { %p4035_p4 = pnand %p4033_p3, %p4030_p2 }
  0x61   :  { %4038 = shalt.err (!%p4035_p4)
}
  0x62   :  { %s4039_s1 = scalar_lea.vmem %s168_s18, 32  ;;  %p4044_p6 = scmp.lt.s32.totalorder %s168_s18, %s168_s18 }
  0x63   :  { %p4040_p5 = scmp.ne.s32.totalorder %s168_s18, %s4039_s1  ;;  %p4045_p7 = scmp.lt.s32.totalorder %s4039_s1, %s4039_s1 }
  0x65   :  { %p4046_p8 = por %p4045_p7, %p4044_p6 }
  0x67   :  { %p4047_p9 = pnand %p4046_p8, %p4040_p5 }
  0x69   :  { %4050 = shalt.err (!%p4047_p9)
}
  0x6a   :  { %173 = dma.hbm_to_vmem [thread:$0]  %s4369_s19, 32, %s168_s18, [#allocation11], %s4254_s26, %s4254_s26, %s4255_s17  }
  0x6b   :  { %s4256_s20 = smov [#allocation13]   ;;  %s4257_s7 = smov [#allocation2]  }
  0x6c   :  { %s199_s2 = sshll.u32 %s4256_s20, 4  ;;  %s83_s0 = sshll.u32 %s4257_s7, 4  ;;  %s200_s2 = int_to_ptr.vmem [resolvable:$true] %s199_s2  ;;  %s84_s0 = int_to_ptr.vmem [resolvable:$true] %s83_s0 }
  0x6d   :  { %s4051_s10 = scalar_lea.hbm %s4399_s12, 32 }
  0x6e   :  { %p4052_p10 = scmp.ne.s32.totalorder %s4399_s12, %s4051_s10  ;;  %p4055_p11 = scmp.lt.u32.totalorder %s4051_s10, %s4399_s12 }
  0x70   :  { %p4057_p12 = pnand %p4055_p11, %p4052_p10 }
  0x72   :  { %4060 = shalt.err (!%p4057_p12)
}
  0x73   :  { %s4061_s11 = scalar_lea.vmem %s200_s2, 32  ;;  %p4066_p0 = scmp.lt.s32.totalorder %s200_s2, %s200_s2 }
  0x74   :  { %p4062_p13 = scmp.ne.s32.totalorder %s200_s2, %s4061_s11  ;;  %p4067_p1 = scmp.lt.s32.totalorder %s4061_s11, %s4061_s11 }
  0x76   :  { %p4068_p2 = por %p4067_p1, %p4066_p0 }
  0x78   :  { %p4069_p3 = pnand %p4068_p2, %p4062_p13 }
  0x7a   :  { %4072 = shalt.err (!%p4069_p3)
}
  0x7b   :  { %205 = dma.hbm_to_vmem [thread:$0]  %s4399_s12, 32, %s200_s2, [#allocation14], %s4254_s26, %s4254_s26, %s4255_s17  }
  0x7c   :  { %s4073_s19 = scalar_lea.hbm %s4279_s9, 8192 }
  0x7d   :  { %p4074_p4 = scmp.ne.s32.totalorder %s4279_s9, %s4073_s19  ;;  %p4077_p5 = scmp.lt.u32.totalorder %s4073_s19, %s4279_s9 }
  0x7f   :  { %p4079_p6 = pnand %p4077_p5, %p4074_p4 }
  0x81   :  { %4082 = shalt.err (!%p4079_p6)
}
  0x82   :  { %s4083_s15 = scalar_lea.vmem %s84_s0, 8192  ;;  %p4088_p8 = scmp.lt.s32.totalorder %s84_s0, %s84_s0 }
  0x83   :  { %p4084_p7 = scmp.ne.s32.totalorder %s84_s0, %s4083_s15  ;;  %p4089_p9 = scmp.lt.s32.totalorder %s4083_s15, %s4083_s15 }
  0x85   :  { %p4090_p10 = por %p4089_p9, %p4088_p8 }
  0x87   :  { %p4091_p11 = pnand %p4090_p10, %p4084_p7 }
  0x89   :  { %4094 = shalt.err (!%p4091_p11)
}
  0x8a   :  { %s4258_s16 = smov 256   ;;  %s4259_s12 = smov [#allocation6]  }
  0x8b   :  { %89 = dma.hbm_to_vmem [thread:$0]  %s4279_s9, 8192, %s84_s0, [#allocation3], %s4258_s16, %s4258_s16, %s4254_s26  }
  0x8c   :  { %s110_s18 = sshll.u32 %s4259_s12, 4  ;;  %s4260_s22 = smov [#allocation9]   ;;  %s111_s18 = int_to_ptr.vmem [resolvable:$true] %s110_s18 }
  0x8d   :  { %s153_s23 = sshll.u32 %s4260_s22, 4  ;;  %s4095_s28 = scalar_lea.hbm %s4294_s21, 32  ;;  %s4466_s23 = int_to_ptr.vmem [resolvable:$true] %s153_s23 }
  0x8e   :  { %p4096_p12 = scmp.ne.s32.totalorder %s4294_s21, %s4095_s28  ;;  %p4099_p13 = scmp.lt.u32.totalorder %s4095_s28, %s4294_s21 }
  0x90   :  { %p4101_p0 = pnand %p4099_p13, %p4096_p12 }
  0x92   :  { %4104 = shalt.err (!%p4101_p0)
}
  0x93   :  { %s4105_s1 = scalar_lea.vmem %s111_s18, 32  ;;  %p4110_p2 = scmp.lt.s32.totalorder %s111_s18, %s111_s18 }
  0x94   :  { %p4106_p1 = scmp.ne.s32.totalorder %s111_s18, %s4105_s1  ;;  %p4111_p3 = scmp.lt.s32.totalorder %s4105_s1, %s4105_s1 }
  0x96   :  { %p4112_p4 = por %p4111_p3, %p4110_p2 }
  0x98   :  { %p4113_p5 = pnand %p4112_p4, %p4106_p1 }
  0x9a   :  { %4116 = shalt.err (!%p4113_p5)
}
  0x9b   :  { %113 = dma.hbm_to_vmem [thread:$0]  %s4294_s21, 32, %s111_s18, [#allocation5]  }
  0x9c   :  { %s4117_s9 = scalar_lea.hbm %s4359_s4, 32 }
  0x9d   :  { %p4118_p6 = scmp.ne.s32.totalorder %s4359_s4, %s4117_s9  ;;  %p4121_p7 = scmp.lt.u32.totalorder %s4117_s9, %s4359_s4 }
  0x9f   :  { %p4123_p8 = pnand %p4121_p7, %p4118_p6 }
  0xa1   :  { %4126 = shalt.err (!%p4123_p8)
}
  0xa2   :  { %s4127_s20 = scalar_lea.vmem %s4466_s23, 32  ;;  %p4132_p10 = scmp.lt.s32.totalorder %s4466_s23, %s4466_s23 }
  0xa3   :  { %p4128_p9 = scmp.ne.s32.totalorder %s4466_s23, %s4127_s20  ;;  %p4133_p11 = scmp.lt.s32.totalorder %s4127_s20, %s4127_s20 }
  0xa5   :  { %p4134_p12 = por %p4133_p11, %p4132_p10 }
  0xa7   :  { %p4135_p13 = pnand %p4134_p12, %p4128_p9 }
  0xa9   :  { %4138 = shalt.err (!%p4135_p13)
}
  0xaa   :  { %159 = dma.hbm_to_vmem [thread:$0]  %s4359_s4, 32, %s4466_s23, [#allocation8], %s4254_s26, %s4254_s26, %s4255_s17  }
  0xab   :  { %s4261_s21 = smov [#allocation12]   ;;  %s4262_s7 = smov [#allocation15]  }
  0xac   :  { %s181_s2 = sshll.u32 %s4261_s21, 4  ;;  %s213_s0 = sshll.u32 %s4262_s7, 4  ;;  %s182_s2 = int_to_ptr.vmem [resolvable:$true] %s181_s2  ;;  %s4484_s0 = int_to_ptr.vmem [resolvable:$true] %s213_s0 }
  0xad   :  { %s4139_s10 = scalar_lea.hbm %s4379_s6, 32 }
  0xae   :  { %p4140_p0 = scmp.ne.s32.totalorder %s4379_s6, %s4139_s10  ;;  %p4143_p1 = scmp.lt.u32.totalorder %s4139_s10, %s4379_s6 }
  0xb0   :  { %p4145_p2 = pnand %p4143_p1, %p4140_p0 }
  0xb2   :  { %4148 = shalt.err (!%p4145_p2)
}
  0xb3   :  { %s4149_s11 = scalar_lea.vmem %s182_s2, 32  ;;  %p4154_p4 = scmp.lt.s32.totalorder %s182_s2, %s182_s2 }
  0xb4   :  { %p4150_p3 = scmp.ne.s32.totalorder %s182_s2, %s4149_s11  ;;  %p4155_p5 = scmp.lt.s32.totalorder %s4149_s11, %s4149_s11 }
  0xb6   :  { %p4156_p6 = por %p4155_p5, %p4154_p4 }
  0xb8   :  { %p4157_p7 = pnand %p4156_p6, %p4150_p3 }
  0xba   :  { %4160 = shalt.err (!%p4157_p7)
}
  0xbb   :  { %187 = dma.hbm_to_vmem [thread:$0]  %s4379_s6, 32, %s182_s2, [#allocation11], %s4254_s26, %s4254_s26, %s4255_s17  }
  0xbc   :  { %s4161_s4 = scalar_lea.hbm %s4409_s30, 32 }
  0xbd   :  { %p4162_p8 = scmp.ne.s32.totalorder %s4409_s30, %s4161_s4  ;;  %p4165_p9 = scmp.lt.u32.totalorder %s4161_s4, %s4409_s30 }
  0xbf   :  { %p4167_p10 = pnand %p4165_p9, %p4162_p8 }
  0xc1   :  { %4170 = shalt.err (!%p4167_p10)
}
  0xc2   :  { %s4171_s19 = scalar_lea.vmem %s4484_s0, 32  ;;  %p4176_p12 = scmp.lt.s32.totalorder %s4484_s0, %s4484_s0 }
  0xc3   :  { %p4172_p11 = scmp.ne.s32.totalorder %s4484_s0, %s4171_s19  ;;  %p4177_p13 = scmp.lt.s32.totalorder %s4171_s19, %s4171_s19 }
  0xc5   :  { %p4178_p0 = por %p4177_p13, %p4176_p12 }
  0xc7   :  { %p4179_p1 = pnand %p4178_p0, %p4172_p11 }
  0xc9   :  { %4182 = shalt.err (!%p4179_p1)
}
  0xca   :  { %219 = dma.hbm_to_vmem [thread:$0]  %s4409_s30, 32, %s4484_s0, [#allocation14], %s4254_s26, %s4254_s26, %s4255_s17  }
  0xcb   :  { %s4263_s6 = smov [#allocation16]   ;;  %s4183_s16 = scalar_lea.hbm %s4429_s8, 16 }
  0xcc   :  { %s232_s15 = sshll.u32 %s4263_s6, 4  ;;  %p4184_p2 = scmp.ne.s32.totalorder %s4429_s8, %s4183_s16  ;;  %s233_s15 = int_to_ptr.vmem [resolvable:$true] %s232_s15 }
  0xcd   :  { %p4187_p3 = scmp.lt.u32.totalorder %s4183_s16, %s4429_s8 }
  0xcf   :  { %p4189_p4 = pnand %p4187_p3, %p4184_p2 }
  0xd1   :  { %4192 = shalt.err (!%p4189_p4)
}
  0xd2   :  { %s4193_s12 = scalar_lea.vmem %s233_s15, 16  ;;  %s4197_s18 = scalar_lea.vmem %s233_s15, 32 }
  0xd3   :  { %p4194_p5 = scmp.ne.s32.totalorder %s233_s15, %s4193_s12  ;;  %p4198_p6 = scmp.lt.s32.totalorder %s233_s15, %s233_s15 }
  0xd4   :  { %p4199_p7 = scmp.lt.s32.totalorder %s4197_s18, %s4193_s12 }
  0xd6   :  { %p4200_p8 = por %p4199_p7, %p4198_p6 }
  0xd8   :  { %p4201_p9 = pnand %p4200_p8, %p4194_p5 }
  0xda   :  { %4204 = shalt.err (!%p4201_p9)
}
  0xdb   :  { %235 = dma.hbm_to_vmem [thread:$0]  %s4429_s8, 16, %s233_s15, [#allocation17]  }
  0xdc   :  { %4205 = dma.done.wait [#allocation3], 8192  }
  0xdd   :  { %4206 = vsyncadd [#allocation3], 4294959104 }
  0xde   :  { %4207 = dma.done.wait [#allocation5], 8224  }
  0xdf   :  { %4208 = vsyncadd [#allocation5], 4294959072 }
  0xe0   :  { %4209 = dma.done.wait [#allocation8], 64  }
  0xe1   :  { %4210 = vsyncadd [#allocation8], 4294967232 }
  0xe2   :  { %4211 = dma.done.wait [#allocation11], 64  }
  0xe3   :  { %4212 = vsyncadd [#allocation11], 4294967232 }
  0xe4   :  { %4213 = dma.done.wait [#allocation14], 64  }
  0xe5   :  { %4214 = vsyncadd [#allocation14], 4294967232 }
  0xe6   :  { %4215 = dma.done.wait [#allocation17], 16  }
  0xe7   :  { %4216 = vsyncadd [#allocation17], 4294967280  ;;  %v3685_v0 = vld [vmem:[#allocation2 + $0x4] ss:$16 sps:$4 sm:$0xff]   ;;  %v3687_v1 = vld [vmem:[#allocation2] ss:$16 sps:$4 sm:$0xff]  }
  0xe8   :  { %677 = vmatprep.subr.bf16.mxu0 %v3685_v0  ;;  %v3688_v2 = vld [vmem:[#allocation2 + $0x24] ss:$16 sps:$4 sm:$0xff]   ;;  %v3690_v3 = vld [vmem:[#allocation2 + $0x20] ss:$16 sps:$4 sm:$0xff]   ;;  %v3732_v13 = vld [vmem:[#allocation2 + $0xc] ss:$16 sps:$4 sm:$0xff]  }
  0xe9   :  { %678 = vmatpush1.bf16.msra.mxu0 %v3687_v1  ;;  %v3691_v4 = vld [vmem:[#allocation2 + $0x44] ss:$16 sps:$4 sm:$0xff]   ;;  %v3693_v5 = vld [vmem:[#allocation2 + $0x40] ss:$16 sps:$4 sm:$0xff]   ;;  %v3735_v15 = vld [vmem:[#allocation2 + $0x8] ss:$16 sps:$4 sm:$0xff]   ;;  %718 = vmatprep.subr.bf16.mxu1 %v3732_v13 }
  0xea   :  { %679 = vmatprep.subr.bf16.mxu0 %v3688_v2  ;;  %v3694_v6 = vld [vmem:[#allocation2 + $0x64] ss:$16 sps:$4 sm:$0xff]   ;;  %v3696_v7 = vld [vmem:[#allocation2 + $0x60] ss:$16 sps:$4 sm:$0xff]   ;;  %v268_v16 = vld [vmem:[%s4274_s5 + $0x8] sm:$0xff]  ;;  %719 = vmatpush1.bf16.msra.mxu1 %v3735_v15  ;;  %vm4265_vm0 = vmmov 0  }
  0xeb   :  { %v3697_v8 = vld [vmem:[#allocation2 + $0x84] ss:$16 sps:$4 sm:$0xff]   ;;  %v3699_v9 = vld [vmem:[#allocation2 + $0x80] ss:$16 sps:$4 sm:$0xff]   ;;  %v334_v18 = vpack.c.bf16 %v268_v16, %v268_v16  ;;  %v3736_v19 = vld [vmem:[#allocation2 + $0x2c] ss:$16 sps:$4 sm:$0xff]  }
  0xec   :  { %v3700_v10 = vld [vmem:[#allocation2 + $0xa4] ss:$16 sps:$4 sm:$0xff]   ;;  %v3702_v11 = vld [vmem:[#allocation2 + $0xa0] ss:$16 sps:$4 sm:$0xff]   ;;  %v3738_v20 = vld [vmem:[#allocation2 + $0x28] ss:$16 sps:$4 sm:$0xff]   ;;  %720 = vmatprep.subr.bf16.mxu1 %v3736_v19 }
  0xed   :  { %680 = vmatpush1.bf16.msra.mxu0 %v3690_v3  ;;  %v3703_v12 = vld [vmem:[#allocation2 + $0xc4] ss:$16 sps:$4 sm:$0xff]   ;;  %v3705_v14 = vld [vmem:[#allocation2 + $0xc0] ss:$16 sps:$4 sm:$0xff]   ;;  %709 = vmatprep.mubr.bf16.mxu0 %v334_v18  ;;  %v3739_v21 = vld [vmem:[#allocation2 + $0x4c] ss:$16 sps:$4 sm:$0xff]  }
  0xee   :  { %681 = vmatprep.subr.bf16.mxu0 %v3691_v4  ;;  %v3706_v17 = vld [vmem:[#allocation2 + $0xe4] ss:$16 sps:$4 sm:$0xff]   ;;  %750 = vmatprep.mubr.bf16.mxu1 %v334_v18  ;;  %v3708_v22 = vld [vmem:[#allocation2 + $0xe0] ss:$16 sps:$4 sm:$0xff]   ;;  %v3741_v24 = vld [vmem:[#allocation2 + $0x48] ss:$16 sps:$4 sm:$0xff]  }
  0xef   :  { %v3709_v23 = vld [vmem:[#allocation2 + $0x104] ss:$16 sps:$4 sm:$0xff]   ;;  %721 = vmatpush1.bf16.msra.mxu1 %v3738_v20  ;;  %v3742_v25 = vld [vmem:[#allocation2 + $0x6c] ss:$16 sps:$4 sm:$0xff]   ;;  %v3711_v26 = vld [vmem:[#allocation2 + $0x100] ss:$16 sps:$4 sm:$0xff]  }
  0xf0   :  { %722 = vmatprep.subr.bf16.mxu1 %v3739_v21  ;;  %v3712_v27 = vld [vmem:[#allocation2 + $0x124] ss:$16 sps:$4 sm:$0xff]   ;;  %v3744_v28 = vld [vmem:[#allocation2 + $0x68] ss:$16 sps:$4 sm:$0xff]   ;;  %v3745_v29 = vld [vmem:[#allocation2 + $0x8c] ss:$16 sps:$4 sm:$0xff]  }
  0xf1   :  { %682 = vmatpush1.bf16.msra.mxu0 %v3693_v5  ;;  %v3714_v30 = vld [vmem:[#allocation2 + $0x120] ss:$16 sps:$4 sm:$0xff]   ;;  %v3715_v31 = vld [vmem:[#allocation2 + $0x144] ss:$16 sps:$4 sm:$0xff]   ;;  %v3747_v32 = vld [vmem:[#allocation2 + $0x88] ss:$16 sps:$4 sm:$0xff]  }
  0xf2   :  { %683 = vmatprep.subr.bf16.mxu0 %v3694_v6  ;;  %v3748_v33 = vld [vmem:[#allocation2 + $0xac] ss:$16 sps:$4 sm:$0xff]   ;;  %v3717_v34 = vld [vmem:[#allocation2 + $0x140] ss:$16 sps:$4 sm:$0xff]   ;;  %v3718_v35 = vld [vmem:[#allocation2 + $0x164] ss:$16 sps:$4 sm:$0xff]  }
  0xf3   :  { %723 = vmatpush1.bf16.msra.mxu1 %v3741_v24  ;;  %v3750_v36 = vld [vmem:[#allocation2 + $0xa8] ss:$16 sps:$4 sm:$0xff]   ;;  %v3751_v37 = vld [vmem:[#allocation2 + $0xcc] ss:$16 sps:$4 sm:$0xff]   ;;  %v3720_v38 = vld [vmem:[#allocation2 + $0x160] ss:$16 sps:$4 sm:$0xff]  }
  0xf4   :  { %724 = vmatprep.subr.bf16.mxu1 %v3742_v25  ;;  %v3721_v39 = vld [vmem:[#allocation2 + $0x184] ss:$16 sps:$4 sm:$0xff]   ;;  %v3753_v40 = vld [vmem:[#allocation2 + $0xc8] ss:$16 sps:$4 sm:$0xff]   ;;  %v3754_v41 = vld [vmem:[#allocation2 + $0xec] ss:$16 sps:$4 sm:$0xff]  }
  0xf5   :  { %684 = vmatpush1.bf16.msra.mxu0 %v3696_v7  ;;  %v3723_v42 = vld [vmem:[#allocation2 + $0x180] ss:$16 sps:$4 sm:$0xff]   ;;  %v3724_v43 = vld [vmem:[#allocation2 + $0x1a4] ss:$16 sps:$4 sm:$0xff]   ;;  %v3756_v44 = vld [vmem:[#allocation2 + $0xe8] ss:$16 sps:$4 sm:$0xff]  }
  0xf6   :  { %685 = vmatprep.subr.bf16.mxu0 %v3697_v8  ;;  %v3757_v45 = vld [vmem:[#allocation2 + $0x10c] ss:$16 sps:$4 sm:$0xff]   ;;  %v3726_v46 = vld [vmem:[#allocation2 + $0x1a0] ss:$16 sps:$4 sm:$0xff]   ;;  %v3727_v47 = vld [vmem:[#allocation2 + $0x1c4] ss:$16 sps:$4 sm:$0xff]  }
  0xf7   :  { %725 = vmatpush1.bf16.msra.mxu1 %v3744_v28  ;;  %v3759_v48 = vld [vmem:[#allocation2 + $0x108] ss:$16 sps:$4 sm:$0xff]   ;;  %v3760_v49 = vld [vmem:[#allocation2 + $0x12c] ss:$16 sps:$4 sm:$0xff]   ;;  %v3729_v50 = vld [vmem:[#allocation2 + $0x1c0] ss:$16 sps:$4 sm:$0xff]  }
  0xf8   :  { %726 = vmatprep.subr.bf16.mxu1 %v3745_v29  ;;  %v3730_v51 = vld [vmem:[#allocation2 + $0x1e4] ss:$16 sps:$4 sm:$0xff]   ;;  %v3762_v52 = vld [vmem:[#allocation2 + $0x128] ss:$16 sps:$4 sm:$0xff]   ;;  %v3763_v53 = vld [vmem:[#allocation2 + $0x14c] ss:$16 sps:$4 sm:$0xff]  }
  0xf9   :  { %686 = vmatpush1.bf16.msra.mxu0 %v3699_v9  ;;  %v3734_v54 = vld [vmem:[#allocation2 + $0x1e0] ss:$16 sps:$4 sm:$0xff]   ;;  %v3765_v56 = vld [vmem:[#allocation2 + $0x148] ss:$16 sps:$4 sm:$0xff]   ;;  %v3783_v57 = vld [vmem:[#allocation4 + $0x4] ss:$8 sps:$4 sm:$0xff]  }
  0xfa   :  { %687 = vmatprep.subr.bf16.mxu0 %v3700_v10  ;;  %v267_v55 = vld [vmem:[%s4274_s5] sm:$0xff]  ;;  %v3766_v58 = vld [vmem:[#allocation2 + $0x16c] ss:$16 sps:$4 sm:$0xff]   ;;  %v3768_v61 = vld [vmem:[#allocation2 + $0x168] ss:$16 sps:$4 sm:$0xff]   ;;  %s4831_s5 = sld [smem:[#allocation24_spill]] }
  0xfb   :  { %727 = vmatpush1.bf16.msra.mxu1 %v3747_v32  ;;  %v3781_v59 = vld [vmem:[#allocation4] ss:$8 sps:$4 sm:$0xff]   ;;  %v333_v60 = vpack.c.bf16 %v267_v55, %v267_v55  ;;  %v3786_v62 = vld [vmem:[#allocation4 + $0x14] ss:$8 sps:$4 sm:$0xff]   ;;  %v3784_v0 = vld [vmem:[#allocation4 + $0x10] ss:$8 sps:$4 sm:$0xff]  }
  0xfc   :  { %728 = vmatprep.subr.bf16.mxu1 %v3748_v33  ;;  %v3769_v63 = vld [vmem:[#allocation2 + $0x18c] ss:$16 sps:$4 sm:$0xff]   ;;  %v3771_v1 = vld [vmem:[#allocation2 + $0x188] ss:$16 sps:$4 sm:$0xff]   ;;  %vm1549_vm1 = vcmask 261120   ;;  %s4836_s8 = sld [smem:[#allocation31_spill]] }
  0xfd   :  { %688 = vmatpush1.bf16.msra.mxu0 %v3702_v11  ;;  %v3789_v2 = vld [vmem:[#allocation4 + $0x24] ss:$8 sps:$4 sm:$0xff]   ;;  %v3787_v4 = vld [vmem:[#allocation4 + $0x20] ss:$8 sps:$4 sm:$0xff]   ;;  %v3792_v6 = vld [vmem:[#allocation4 + $0x34] ss:$8 sps:$4 sm:$0xff]  }
  0xfe   :  { %689 = vmatprep.subr.bf16.mxu0 %v3703_v12  ;;  %v3772_v3 = vld [vmem:[#allocation2 + $0x1ac] ss:$16 sps:$4 sm:$0xff]   ;;  %v3774_v5 = vld [vmem:[#allocation2 + $0x1a8] ss:$16 sps:$4 sm:$0xff]   ;;  %s4837_s30 = sld [smem:[#allocation32_spill]]  ;;  %s4838_s26 = sld [smem:[#allocation26_spill]] }
  0xff   :  { %729 = vmatpush1.bf16.msra.mxu1 %v3750_v36  ;;  %v3775_v7 = vld [vmem:[#allocation2 + $0x1cc] ss:$16 sps:$4 sm:$0xff]   ;;  %v3790_v8 = vld [vmem:[#allocation4 + $0x30] ss:$8 sps:$4 sm:$0xff]   ;;  %v3793_v12 = vld [vmem:[#allocation4 + $0x40] ss:$8 sps:$4 sm:$0xff]  }
 0x100   :  { %730 = vmatprep.subr.bf16.mxu1 %v3751_v37  ;;  %v3777_v9 = vld [vmem:[#allocation2 + $0x1c8] ss:$16 sps:$4 sm:$0xff]   ;;  %v3795_v10 = vld [vmem:[#allocation4 + $0x44] ss:$8 sps:$4 sm:$0xff]   ;;  %v3804_v18 = vld [vmem:[#allocation4 + $0x74] ss:$8 sps:$4 sm:$0xff]  }
 0x101   :  { %690 = vmatpush1.bf16.msra.mxu0 %v3705_v14  ;;  %v3778_v11 = vld [vmem:[#allocation2 + $0x1ec] ss:$16 sps:$4 sm:$0xff]   ;;  %v3780_v13 = vld [vmem:[#allocation2 + $0x1e8] ss:$16 sps:$4 sm:$0xff]   ;;  %v3877_v37 = vld [vmem:[%s4299_s25 + $0x40] sm:$0xff]   ;;  %s4839_s17 = sld [smem:[#allocation27_spill]] }
 0x102   :  { %691 = vmatprep.subr.bf16.mxu0 %v3706_v17  ;;  %v3798_v14 = vld [vmem:[#allocation4 + $0x54] ss:$8 sps:$4 sm:$0xff]   ;;  %v3796_v15 = vld [vmem:[#allocation4 + $0x50] ss:$8 sps:$4 sm:$0xff]   ;;  %v3801_v16 = vld [vmem:[#allocation4 + $0x64] ss:$8 sps:$4 sm:$0xff]  }
 0x103   :  { %731 = vmatpush1.bf16.msra.mxu1 %v3753_v40  ;;  %v3799_v17 = vld [vmem:[#allocation4 + $0x60] ss:$8 sps:$4 sm:$0xff]   ;;  %v3802_v19 = vld [vmem:[#allocation4 + $0x70] ss:$8 sps:$4 sm:$0xff]   ;;  %v3807_v20 = vld [vmem:[#allocation4 + $0x84] ss:$8 sps:$4 sm:$0xff]  }
 0x104   :  { %732 = vmatprep.subr.bf16.mxu1 %v3754_v41  ;;  %v3805_v21 = vld [vmem:[#allocation4 + $0x80] ss:$8 sps:$4 sm:$0xff]   ;;  %v3813_v24 = vld [vmem:[#allocation4 + $0xa4] ss:$8 sps:$4 sm:$0xff]   ;;  %v3881_v41 = vld [vmem:[%s4299_s25 + $0x50] sm:$0xff]   ;;  %s4840_s22 = sld [smem:[#allocation33_spill]] }
 0x105   :  { %692 = vmatpush1.bf16.msra.mxu0 %v3708_v22  ;;  %v3810_v22 = vld [vmem:[#allocation4 + $0x94] ss:$8 sps:$4 sm:$0xff]   ;;  %v3811_v25 = vld [vmem:[#allocation4 + $0xa0] ss:$8 sps:$4 sm:$0xff]   ;;  %v3819_v28 = vld [vmem:[#allocation4 + $0xc4] ss:$8 sps:$4 sm:$0xff]  }
 0x106   :  { %693 = vmatprep.subr.bf16.mxu0 %v3709_v23  ;;  %v3808_v23 = vld [vmem:[#allocation4 + $0x90] ss:$8 sps:$4 sm:$0xff]   ;;  %v3817_v29 = vld [vmem:[#allocation4 + $0xc0] ss:$8 sps:$4 sm:$0xff]   ;;  %v3825_v32 = vld [vmem:[#allocation4 + $0xe4] ss:$8 sps:$4 sm:$0xff]  }
 0x107   :  { %733 = vmatpush1.bf16.msra.mxu1 %v3756_v44  ;;  %v3823_v33 = vld [vmem:[#allocation4 + $0xe0] ss:$8 sps:$4 sm:$0xff]   ;;  %v3831_v36 = vld [vmem:[#allocation4 + $0x104] ss:$8 sps:$4 sm:$0xff]   ;;  %v3884_v44 = vld [vmem:[%s4299_s25 + $0x18] sm:$0xff]   ;;  %s4841_s23 = sld [smem:[#allocation36_spill]] }
 0x108   :  { %734 = vmatprep.subr.bf16.mxu1 %v3757_v45  ;;  %v3880_v40 = vld [vmem:[%s4299_s25 + $0x8] sm:$0xff]   ;;  %v3885_v45 = vld [vmem:[%s4299_s25 + $0x60] sm:$0xff]   ;;  %s4842_s28 = sld [smem:[#allocation34_spill]]  ;;  %s4843_s1 = sld [smem:[#allocation35_spill]] }
 0x109   :  { %694 = vmatpush1.bf16.msra.mxu0 %v3711_v26  ;;  %v3816_v26 = vld [vmem:[#allocation4 + $0xb4] ss:$8 sps:$4 sm:$0xff]   ;;  %s4844_s9 = sld [smem:[#allocation37_spill]]  ;;  %s4845_s20 = sld [smem:[#allocation38_spill]] }
 0x10a   :  { %695 = vmatprep.subr.bf16.mxu0 %v3712_v27  ;;  %v3814_v27 = vld [vmem:[#allocation4 + $0xb0] ss:$8 sps:$4 sm:$0xff]  }
 0x10b   :  { %735 = vmatpush1.bf16.msra.mxu1 %v3759_v48  ;;  %v3888_v48 = vld [vmem:[%s4299_s25 + $0x28] sm:$0xff]  }
 0x10c   :  { %736 = vmatprep.subr.bf16.mxu1 %v3760_v49  ;;  %v337_v49 = vlaneseq }
 0x10d   :  { %696 = vmatpush1.bf16.msra.mxu0 %v3714_v30  ;;  %v3822_v30 = vld [vmem:[#allocation4 + $0xd4] ss:$8 sps:$4 sm:$0xff]  }
 0x10e   :  { %697 = vmatprep.subr.bf16.mxu0 %v3715_v31  ;;  %v3820_v31 = vld [vmem:[#allocation4 + $0xd0] ss:$8 sps:$4 sm:$0xff]  }
 0x10f   :  { %737 = vmatpush1.bf16.msra.mxu1 %v3762_v52  ;;  %v4527_v52 = vld [vmem:[%s4284_s13] sm:$0xf]  ;;  %s4832_s13 = sld [smem:[#allocation25_spill]] }
 0x110   :  { %738 = vmatprep.subr.bf16.mxu1 %v3763_v53 }
 0x111   :  { %698 = vmatpush1.bf16.msra.mxu0 %v3717_v34  ;;  %v3828_v34 = vld [vmem:[#allocation4 + $0xf4] ss:$8 sps:$4 sm:$0xff]  }
 0x112   :  { %699 = vmatprep.subr.bf16.mxu0 %v3718_v35  ;;  %v3826_v35 = vld [vmem:[#allocation4 + $0xf0] ss:$8 sps:$4 sm:$0xff]  }
 0x113   :  { %739 = vmatpush1.bf16.msra.mxu1 %v3765_v56 }
 0x114   :  { %740 = vmatprep.subr.bf16.mxu1 %v3766_v58 }
 0x115   :  { %700 = vmatpush1.bf16.msra.mxu0 %v3720_v38  ;;  %v3878_v38 = vld [vmem:[%s4299_s25] sm:$0xff]  }
 0x116   :  { %701 = vmatprep.subr.bf16.mxu0 %v3721_v39  ;;  %v3879_v39 = vld [vmem:[%s4299_s25 + $0x48] sm:$0xff]  }
 0x117   :  { %741 = vmatpush1.bf16.msra.mxu1 %v3768_v61 }
 0x118   :  { %742 = vmatprep.subr.bf16.mxu1 %v3769_v63 }
 0x119   :  { %702 = vmatpush1.bf16.msra.mxu0 %v3723_v42  ;;  %v3882_v42 = vld [vmem:[%s4299_s25 + $0x10] sm:$0xff]  }
 0x11a   :  { %703 = vmatprep.subr.bf16.mxu0 %v3724_v43  ;;  %v3883_v43 = vld [vmem:[%s4299_s25 + $0x58] sm:$0xff]  }
 0x11b   :  { %743 = vmatpush1.bf16.msra.mxu1 %v3771_v1  ;;  %v3829_v1 = vld [vmem:[#allocation4 + $0x100] ss:$8 sps:$4 sm:$0xff]  }
 0x11c   :  { %744 = vmatprep.subr.bf16.mxu1 %v3772_v3  ;;  %v3834_v3 = vld [vmem:[#allocation4 + $0x114] ss:$8 sps:$4 sm:$0xff]  }
 0x11d   :  { %704 = vmatpush1.bf16.msra.mxu0 %v3726_v46  ;;  %v3886_v46 = vld [vmem:[%s4299_s25 + $0x20] sm:$0xff]  }
 0x11e   :  { %705 = vmatprep.subr.bf16.mxu0 %v3727_v47  ;;  %v3887_v47 = vld [vmem:[%s4299_s25 + $0x68] sm:$0xff]  }
 0x11f   :  { %745 = vmatpush1.bf16.msra.mxu1 %v3774_v5  ;;  %v3837_v5 = vld [vmem:[#allocation4 + $0x124] ss:$8 sps:$4 sm:$0xff]  }
 0x120   :  { %746 = vmatprep.subr.bf16.mxu1 %v3775_v7  ;;  %v3840_v7 = vld [vmem:[#allocation4 + $0x134] ss:$8 sps:$4 sm:$0xff]  }
 0x121   :  { %706 = vmatpush1.bf16.msra.mxu0 %v3729_v50  ;;  %v4523_v50 = vshrl.u32 %v337_v49, 7  ;;  %v3891_v49 = vld [vmem:[%s4299_s25 + $0x78] sm:$0xff]  }
 0x122   :  { %707 = vmatprep.subr.bf16.mxu0 %v3730_v51 }
 0x123   :  { %747 = vmatpush1.bf16.msra.mxu1 %v3777_v9  ;;  %v339_v51 = vsub.s32 0, %v4523_v50  ;;  %v343_v53 = vsub.s32 1, %v4523_v50  ;;  %v3838_v9 = vld [vmem:[#allocation4 + $0x130] ss:$8 sps:$4 sm:$0xff]  }
 0x124   :  { %748 = vmatprep.subr.bf16.mxu1 %v3778_v11 }
 0x125   :  { %708 = vmatpush1.bf16.msra.mxu0 %v3734_v54  ;;  %v340_v54 = vrot.slane %v4527_v52, %v339_v51  ;;  %v344_v55 = vrot.slane %v4527_v52, %v343_v53 }
 0x126   :  { %1163 = vmatprep.subr.bf16.mxu0 %v3783_v57 }
 0x127   :  { %749 = vmatpush1.bf16.msra.mxu1 %v3780_v13  ;;  %v3841_v13 = vld [vmem:[#allocation4 + $0x140] ss:$8 sps:$4 sm:$0xff]  }
 0x128   :  { %710 = vmatmul.mubr.bf16.vlgmr.msra.gmra.mrb[0].mxu0 %v333_v60  ;;  %3348 = vmatprep.subr.bf16.mxu1 %v3877_v37  ;;  %v3870_v37 = vld [vmem:[#allocation4 + $0x1d4] ss:$8 sps:$4 sm:$0xff]  }
 0x129   :  { %1164 = vmatpush1.bf16.msra.mxu0 %v3781_v59 }
 0x12a   :  { %1165 = vmatprep.subr.bf16.mxu0 %v3786_v62  ;;  %751 = vmatmul.mubr.bf16.vlgmr.msra.gmra.mrb[0].mxu1 %v333_v60 }
 0x12b   :  { %3349 = vmatpush3.bf16.msra.mxu1 %v3878_v38  ;;  %v3868_v38 = vld [vmem:[#allocation4 + $0x1d0] ss:$8 sps:$4 sm:$0xff]  }
 0x12c   :  { %3350 = vmatprep.subr.bf16.mxu1 %v3879_v39 }
 0x12d   :  { %1166 = vmatpush1.bf16.msra.mxu0 %v3784_v0 }
 0x12e   :  { %1167 = vmatprep.subr.bf16.mxu0 %v3789_v2 }
 0x12f   :  { %3351 = vmatpush3.bf16.msra.mxu1 %v3880_v40  ;;  %v3873_v40 = vld [vmem:[#allocation4 + $0x1e4] ss:$8 sps:$4 sm:$0xff]  }
 0x130   :  { %3352 = vmatprep.subr.bf16.mxu1 %v3881_v41  ;;  %v3871_v41 = vld [vmem:[#allocation4 + $0x1e0] ss:$8 sps:$4 sm:$0xff]  }
 0x131   :  { %1168 = vmatpush1.bf16.msra.mxu0 %v3787_v4  ;;  %v3832_v4 = vld [vmem:[#allocation4 + $0x110] ss:$8 sps:$4 sm:$0xff]  }
 0x132   :  { %1169 = vmatprep.subr.bf16.mxu0 %v3792_v6  ;;  %v3835_v6 = vld [vmem:[#allocation4 + $0x120] ss:$8 sps:$4 sm:$0xff]  }
 0x133   :  { %3353 = vmatpush3.bf16.msra.mxu1 %v3882_v42 }
 0x134   :  { %3354 = vmatprep.subr.bf16.mxu1 %v3883_v43  ;;  %v3876_v43 = vld [vmem:[#allocation4 + $0x1f4] ss:$8 sps:$4 sm:$0xff]  }
 0x135   :  { %1170 = vmatpush1.bf16.msra.mxu0 %v3790_v8  ;;  %v351_v8 = vsub.s32 3, %v4523_v50 }
 0x136   :  { %1171 = vmatprep.subr.bf16.mxu0 %v3795_v10  ;;  %v3843_v10 = vld [vmem:[#allocation4 + $0x144] ss:$8 sps:$4 sm:$0xff]  }
 0x137   :  { %3355 = vmatpush3.bf16.msra.mxu1 %v3884_v44  ;;  %v352_v11 = vrot.slane %v4527_v52, %v351_v8  ;;  %v3874_v44 = vld [vmem:[#allocation4 + $0x1f0] ss:$8 sps:$4 sm:$0xff]  }
 0x138   :  { %3356 = vmatprep.subr.bf16.mxu1 %v3885_v45  ;;  %v3900_v8 = vld [vmem:[%s4309_s3 + $0x38] sm:$0xff]  }
 0x139   :  { %1172 = vmatpush1.bf16.msra.mxu0 %v3793_v12 }
 0x13a   :  { %1173 = vmatprep.subr.bf16.mxu0 %v3798_v14 }
 0x13b   :  { %3357 = vmatpush3.bf16.msra.mxu1 %v3886_v46 }
 0x13c   :  { %3358 = vmatprep.subr.bf16.mxu1 %v3887_v47  ;;  %v3889_v47 = vld [vmem:[%s4299_s25 + $0x70] sm:$0xff]  }
 0x13d   :  { %1174 = vmatpush1.bf16.msra.mxu0 %v3796_v15  ;;  %v3846_v15 = vld [vmem:[#allocation4 + $0x154] ss:$8 sps:$4 sm:$0xff]  }
 0x13e   :  { %1175 = vmatprep.subr.bf16.mxu0 %v3801_v16 }
 0x13f   :  { %3359 = vmatpush3.bf16.msra.mxu1 %v3888_v48  ;;  %v3890_v48 = vld [vmem:[%s4299_s25 + $0x30] sm:$0xff]  }
 0x140   :  { %3360 = vmatprep.subr.bf16.mxu1 %v3889_v47  ;;  %v3906_v47 = vld [vmem:[%s4837_s30 + $0x8] sm:$0xff]  }
 0x141   :  { %1176 = vmatpush1.bf16.msra.mxu0 %v3799_v17 }
 0x142   :  { %1177 = vmatprep.subr.bf16.mxu0 %v3804_v18 }
 0x143   :  { %3361 = vmatpush3.bf16.msra.mxu1 %v3890_v48  ;;  %v3230_v48 = vld [vmem:[#allocation7] ss:$0 sm:$0xff] }
 0x144   :  { %3362 = vmatprep.subr.bf16.mxu1 %v3891_v49 }
 0x145   :  { %1178 = vmatpush1.bf16.msra.mxu0 %v3802_v19 }
 0x146   :  { %1179 = vmatprep.subr.bf16.mxu0 %v3807_v20  ;;  %v3844_v20 = vld [vmem:[#allocation4 + $0x150] ss:$8 sps:$4 sm:$0xff]  }
 0x149   :  { %1180 = vmatpush1.bf16.msra.mxu0 %v3805_v21  ;;  %v3849_v21 = vld [vmem:[#allocation4 + $0x164] ss:$8 sps:$4 sm:$0xff]  }
 0x14a   :  { %1181 = vmatprep.subr.bf16.mxu0 %v3810_v22 }
 0x14d   :  { %1182 = vmatpush1.bf16.msra.mxu0 %v3808_v23  ;;  %v3847_v23 = vld [vmem:[#allocation4 + $0x160] ss:$8 sps:$4 sm:$0xff]  }
 0x14e   :  { %1183 = vmatprep.subr.bf16.mxu0 %v3813_v24  ;;  %v3852_v24 = vld [vmem:[#allocation4 + $0x174] ss:$8 sps:$4 sm:$0xff]  }
 0x151   :  { %1184 = vmatpush1.bf16.msra.mxu0 %v3811_v25  ;;  %v3850_v25 = vld [vmem:[#allocation4 + $0x170] ss:$8 sps:$4 sm:$0xff]  }
 0x152   :  { %1185 = vmatprep.subr.bf16.mxu0 %v3816_v26  ;;  %v3855_v26 = vld [vmem:[#allocation4 + $0x184] ss:$8 sps:$4 sm:$0xff]  }
 0x155   :  { %1186 = vmatpush1.bf16.msra.mxu0 %v3814_v27  ;;  %v3853_v27 = vld [vmem:[#allocation4 + $0x180] ss:$8 sps:$4 sm:$0xff]  }
 0x156   :  { %1187 = vmatprep.subr.bf16.mxu0 %v3819_v28  ;;  %v3858_v28 = vld [vmem:[#allocation4 + $0x194] ss:$8 sps:$4 sm:$0xff]  }
 0x159   :  { %1188 = vmatpush1.bf16.msra.mxu0 %v3817_v29  ;;  %v3856_v29 = vld [vmem:[#allocation4 + $0x190] ss:$8 sps:$4 sm:$0xff]  }
 0x15a   :  { %1189 = vmatprep.subr.bf16.mxu0 %v3822_v30  ;;  %v3861_v30 = vld [vmem:[#allocation4 + $0x1a4] ss:$8 sps:$4 sm:$0xff]  }
 0x15d   :  { %1190 = vmatpush1.bf16.msra.mxu0 %v3820_v31  ;;  %v3859_v31 = vld [vmem:[#allocation4 + $0x1a0] ss:$8 sps:$4 sm:$0xff]  }
 0x15e   :  { %1191 = vmatprep.subr.bf16.mxu0 %v3825_v32  ;;  %v3864_v32 = vld [vmem:[#allocation4 + $0x1b4] ss:$8 sps:$4 sm:$0xff]  }
 0x161   :  { %1192 = vmatpush1.bf16.msra.mxu0 %v3823_v33  ;;  %v3862_v33 = vld [vmem:[#allocation4 + $0x1b0] ss:$8 sps:$4 sm:$0xff]  }
 0x162   :  { %1193 = vmatprep.subr.bf16.mxu0 %v3828_v34  ;;  %v3867_v34 = vld [vmem:[#allocation4 + $0x1c4] ss:$8 sps:$4 sm:$0xff]  }
 0x165   :  { %1194 = vmatpush1.bf16.msra.mxu0 %v3826_v35  ;;  %v3865_v35 = vld [vmem:[#allocation4 + $0x1c0] ss:$8 sps:$4 sm:$0xff]  }
 0x166   :  { %1204 = vmatprep.subr.bf16.mxu0 %v3831_v36  ;;  %v347_v36 = vsub.s32 2, %v4523_v50  ;;  %v3894_v50 = vld [vmem:[%s4309_s3 + $0x8] sm:$0xff]  }
 0x168   :  { %v348_v39 = vrot.slane %v4527_v52, %v347_v36  ;;  %v3892_v52 = vld [vmem:[%s4299_s25 + $0x38] sm:$0xff]   ;;  %s4833_s25 = sld [smem:[#allocation30_spill]] }
 0x169   :  { %3363 = vmatpush3.bf16.msra.mxu1 %v3892_v52 }
 0x1fb   :  { %v711_v56 = vpop.f32.mrb[0].mxu0 }
 0x1fc   :  { %v712_v57 = vadd.f32 %v711_v56, %v340_v54  ;;  %v713_v58 = vpop.f32.mrb[1].mxu0  ;;  %v4264_v54 = vmov 0.0  }
 0x1fd   :  { %v714_v59 = vadd.f32 %v713_v58, %v344_v55  ;;  %v715_v60 = vpop.f32.mrb[2].mxu0  ;;  %v752_v12 = vpop.f32.mrb[0].mxu1  ;;  %3446 = vmatprep.subr.bf16.mxu1 %v4264_v54  ;;  %v831_v55 = vld [vmem:[#allocation6] sm:$0x3] }
 0x1fe   :  { %v759_v61 = vmax.f32 %v712_v57, 0.0  ;;  %v716_v62 = vpop.f32.mrb[3].mxu0  ;;  %v754_v14 = vpop.f32.mrb[1].mxu1  ;;  %v753_v42 = vadd.f32 %v752_v12, %v348_v39  ;;  %v836_v56 = vrot.slane %v831_v55, %v339_v51  ;;  %v840_v57 = vrot.slane %v831_v55, %v343_v53  ;;  %v3895_v51 = vld [vmem:[%s4309_s3 + $0x10] sm:$0xff]   ;;  %v3896_v53 = vld [vmem:[%s4309_s3 + $0x18] sm:$0xff]  }
 0x1ff   :  { %v760_v63 = vmax.f32 %v714_v59, 0.0  ;;  %v755_v16 = vadd.f32 %v754_v14, %v352_v11  ;;  %v756_v17 = vpop.f32.mrb[2].mxu1 }
 0x200   :  { %v827_v2 = vpack.c.bf16 %v759_v61, %v759_v61  ;;  %v757_v18 = vpop.f32.mrb[3].mxu1  ;;  %v761_v45 = vmax.f32 %v753_v42, 0.0 }
 0x201   :  { %v828_v0 = vpack.c.bf16 %v760_v63, %v760_v63  ;;  %v762_v19 = vmax.f32 %v755_v16, 0.0  ;;  %v3219_v18 = vld [vmem:[%s4831_s5] ss:$0 sm:$0xff] }
 0x202   :  { %v829_v46 = vpack.c.bf16 %v761_v45, %v761_v45  ;;  %v3904_v45 = vld [vmem:[%s4836_s8 + $0x8] sm:$0xff]  }
 0x203   :  { %1195 = vmatprep.mubr.bf16.mxu0 %v828_v0  ;;  %v830_v22 = vpack.c.bf16 %v762_v19, %v762_v19 }
 0x204   :  { %1196 = vmatmul.mubr.bf16.vlgmr.msra.gmra.mrb[4].mxu0 %v827_v2 }
 0x205   :  { %1205 = vmatpush1.bf16.msra.mxu0 %v3829_v1  ;;  %1236 = vmatprep.mubr.bf16.mxu0 %v830_v22 }
 0x206   :  { %1206 = vmatprep.subr.bf16.mxu0 %v3834_v3  ;;  %v3893_v3 = vld [vmem:[%s4309_s3] sm:$0xff]  }
 0x209   :  { %1207 = vmatpush1.bf16.msra.mxu0 %v3832_v4 }
 0x20a   :  { %1208 = vmatprep.subr.bf16.mxu0 %v3837_v5  ;;  %v3897_v5 = vld [vmem:[%s4309_s3 + $0x20] sm:$0xff]  }
 0x20d   :  { %1209 = vmatpush1.bf16.msra.mxu0 %v3835_v6  ;;  %v3898_v6 = vld [vmem:[%s4309_s3 + $0x28] sm:$0xff]  }
 0x20e   :  { %1210 = vmatprep.subr.bf16.mxu0 %v3840_v7  ;;  %v3899_v7 = vld [vmem:[%s4309_s3 + $0x30] sm:$0xff]   ;;  %s4835_s3 = sld [smem:[#allocation29_spill]] }
 0x211   :  { %1211 = vmatpush1.bf16.msra.mxu0 %v3838_v9 }
 0x212   :  { %1212 = vmatprep.subr.bf16.mxu0 %v3843_v10  ;;  %v3202_v10 = vld [vmem:[%s4304_s29] ss:$0 sm:$0xff]  ;;  %s4834_s29 = sld [smem:[#allocation28_spill]] }
 0x215   :  { %1213 = vmatpush1.bf16.msra.mxu0 %v3841_v13 }
 0x216   :  { %1214 = vmatprep.subr.bf16.mxu0 %v3846_v15 }
 0x219   :  { %1215 = vmatpush1.bf16.msra.mxu0 %v3844_v20  ;;  %v1537_v20 = vld [vmem:[%s4832_s13] sm:$0xff] }
 0x21a   :  { %1216 = vmatprep.subr.bf16.mxu0 %v3849_v21 }
 0x21d   :  { %1217 = vmatpush1.bf16.msra.mxu0 %v3847_v23 }
 0x21e   :  { %1218 = vmatprep.subr.bf16.mxu0 %v3852_v24 }
 0x221   :  { %1219 = vmatpush1.bf16.msra.mxu0 %v3850_v25 }
 0x222   :  { %1220 = vmatprep.subr.bf16.mxu0 %v3855_v26 }
 0x225   :  { %1221 = vmatpush1.bf16.msra.mxu0 %v3853_v27 }
 0x226   :  { %1222 = vmatprep.subr.bf16.mxu0 %v3858_v28 }
 0x229   :  { %1223 = vmatpush1.bf16.msra.mxu0 %v3856_v29 }
 0x22a   :  { %1224 = vmatprep.subr.bf16.mxu0 %v3861_v30 }
 0x22d   :  { %1225 = vmatpush1.bf16.msra.mxu0 %v3859_v31 }
 0x22e   :  { %1226 = vmatprep.subr.bf16.mxu0 %v3864_v32  ;;  %v3901_v32 = vld [vmem:[%s4833_s25] sm:$0xff]  }
 0x231   :  { %1227 = vmatpush1.bf16.msra.mxu0 %v3862_v33  ;;  %v3902_v33 = vld [vmem:[%s4833_s25 + $0x8] sm:$0xff]  }
 0x232   :  { %1228 = vmatprep.subr.bf16.mxu0 %v3867_v34 }
 0x235   :  { %1229 = vmatpush1.bf16.msra.mxu0 %v3865_v35 }
 0x236   :  { %1230 = vmatprep.subr.bf16.mxu0 %v3870_v37 }
 0x239   :  { %1231 = vmatpush1.bf16.msra.mxu0 %v3868_v38  ;;  %v3228_v38 = vld [vmem:[%s4834_s29] ss:$0 sm:$0xff] }
 0x23a   :  { %1232 = vmatprep.subr.bf16.mxu0 %v3873_v40  ;;  %v3229_v40 = vld [vmem:[%s4835_s3] ss:$0 sm:$0xff] }
 0x23d   :  { %1233 = vmatpush1.bf16.msra.mxu0 %v3871_v41 }
 0x23e   :  { %1234 = vmatprep.subr.bf16.mxu0 %v3876_v43  ;;  %v3903_v43 = vld [vmem:[%s4836_s8] sm:$0xff]  }
 0x241   :  { %1235 = vmatpush1.bf16.msra.mxu0 %v3874_v44 }
 0x242   :  { %3522 = vmatprep.subr.bf16.mxu0 %v4264_v54 }
 0x244   :  { %1237 = vmatmul.mubr.bf16.vlgmr.msra.gmra.mrb[4].mxu0 %v829_v46  ;;  %v3905_v46 = vld [vmem:[%s4837_s30] sm:$0xff]  }
 0x245   :  { %3538 = vmatprep.mubr.msk.bf16.mxu0 %vm4265_vm0, %v4264_v54 }
 0x317   :  { %v1238_v58 = vpop.f32.mrb[4].mxu0 }
 0x318   :  { %v3626_v59 = vadd.f32 %v1238_v58, %v836_v56  ;;  %v1240_v60 = vpop.f32.mrb[5].mxu0 }
 0x319   :  { %v3627_v61 = vadd.f32 %v1240_v60, %v840_v57  ;;  %v1242_v62 = vpop.f32.mrb[6].mxu0  ;;  %v4603_v60 = vld [vmem:[%s4838_s26] sm:$0xff] }
 0x31a   :  { %v1245_v63 = vmax.f32 %v3626_v59, 0.0  ;;  %v1243_v0 = vpop.f32.mrb[7].mxu0  ;;  %v3234_v59 = vld [vmem:[#allocation9] ss:$0 sm:$0xff]  ;;  %v4609_v62 = vld [vmem:[%s4838_s26 + $0x10] sm:$0xff] }
 0x31b   :  { %v1246_v1 = vmax.f32 %v3627_v61, 0.0  ;;  %v4606_v61 = vld [vmem:[%s4838_s26 + $0x8] sm:$0xff] }
 0x31c   :  { %v1279_v4 = vpack.c.bf16 %v1245_v63, %v1245_v63  ;;  %v4612_v63 = vld [vmem:[%s4838_s26 + $0x18] sm:$0xff] }
 0x31d   :  { %v1280_v2 = vpack.c.bf16 %v1246_v1, %v1246_v1 }
 0x31f   :  { %1416 = vmatprep.mubr.bf16.mxu1 %v1280_v2 }
 0x320   :  { %1417 = vmatmul.mubr.bf16.vlgmr.msra.gmra.mrb[4].mxu1 %v1279_v4 }
 0x321   :  { %3447 = vmatpush3.bf16.msra.mxu1 %v3893_v3  ;;  %3462 = vmatprep.mubr.msk.bf16.mxu1 %vm4265_vm0, %v4264_v54 }
 0x322   :  { %3448 = vmatprep.subr.bf16.mxu1 %v4264_v54 }
 0x325   :  { %3449 = vmatpush3.bf16.msra.mxu1 %v3894_v50 }
 0x326   :  { %3450 = vmatprep.subr.bf16.mxu1 %v4264_v54 }
 0x329   :  { %3451 = vmatpush3.bf16.msra.mxu1 %v3895_v51 }
 0x32a   :  { %3452 = vmatprep.subr.bf16.mxu1 %v4264_v54 }
 0x32d   :  { %3453 = vmatpush3.bf16.msra.mxu1 %v3896_v53 }
 0x32e   :  { %3454 = vmatprep.subr.bf16.mxu1 %v4264_v54 }
 0x331   :  { %3455 = vmatpush3.bf16.msra.mxu1 %v3897_v5 }
 0x332   :  { %3456 = vmatprep.subr.bf16.mxu1 %v4264_v54 }
 0x335   :  { %3457 = vmatpush3.bf16.msra.mxu1 %v3898_v6 }
 0x336   :  { %3458 = vmatprep.subr.bf16.mxu1 %v4264_v54 }
 0x339   :  { %3459 = vmatpush3.bf16.msra.mxu1 %v3899_v7  ;;  %v3238_v7 = vld [vmem:[#allocation10] ss:$0 sm:$0xff] }
 0x33a   :  { %3460 = vmatprep.subr.bf16.mxu1 %v4264_v54 }
 0x33d   :  { %3461 = vmatpush3.bf16.msra.mxu1 %v3900_v8 }
 0x33e   :  { %3466 = vmatprep.subr.bf16.mxu1 %v4264_v54 }
 0x3f3   :  { %v3364_v9 = vpop.f32.mrb[4].mxu1 }
 0x3f4   :  { %v3365_v11 = vpop.f32.mrb[5].mxu1 }
 0x3f5   :  { %v3366_v12 = vadd.f32 %v3365_v11, %v3364_v9  ;;  %v3367_v13 = vpop.f32.mrb[6].mxu1 }
 0x3f6   :  { %v3368_v14 = vpop.f32.mrb[7].mxu1 }
 0x3f7   :  { %v1419_v15 = vadd.f32 %v3366_v12, %v3202_v10 }
 0x3f9   :  { %v1424_v16 = vmax.f32 %v1419_v15, 0.0 }
 0x3fb   :  { %v1441_v17 = vpack.c.bf16 %v1424_v16, %v1424_v16 }
 0x3fd   :  { %3463 = vmatmul.mubr.bf16.vlgmr.msra.gmra.mrb[8].mxu1 %v1441_v17 }
 0x3fe   :  { %3470 = vmatprep.mubr.msk.bf16.mxu1 %vm4265_vm0, %v4264_v54  ;;  %3467 = vmatpush3.bf16.msra.mxu1 %v3901_v32 }
 0x3ff   :  { %3468 = vmatprep.subr.bf16.mxu1 %v4264_v54 }
 0x402   :  { %3469 = vmatpush3.bf16.msra.mxu1 %v3902_v33 }
 0x403   :  { %3474 = vmatprep.subr.bf16.mxu1 %v4264_v54 }
 0x4d0   :  { %v1531_v19 = vpop.f32.mrb[8].mxu1 }
 0x4d1   :  { %v1532_v21 = vadd.f32 %v3219_v18, %v1531_v19  ;;  %v3464_v22 = vpop.f32.mrb[9].mxu1 }
 0x4d2   :  { %v1534_v23 = vpop.f32.mrb[10].mxu1  ;;  %v4629_v22 = vld [vmem:[%s4839_s17 + $0x10] sm:$0xff] }
 0x4d3   :  { %v4575_v24 = vadd.f32 %v1537_v20, %v1532_v21  ;;  %v3465_v25 = vpop.f32.mrb[11].mxu1  ;;  %v4632_v23 = vld [vmem:[%s4839_s17] sm:$0xff] }
 0x4d5   :  { %v1550_v26 = vsel %vm1549_vm1, %v4575_v24, 0.0 }
 0x4d6   :  { %1551 = vadd.xlane.f32.xlu0 %v1550_v26 }
 0x563   :  { %v1552_v27 = vpop.xlane.xlu0 %1551 }
 0x564   :  { %v1554_v28 = vmul.f32 0.03125, %v1552_v27 }
 0x566   :  { %v1555_v29 = vsub.f32 %v4575_v24, %v1554_v28  ;;  %v4636_v28 = vld [vmem:[%s4839_s17 + $0x8] sm:$0xff] }
 0x568   :  { %v1556_v30 = vmul.f32 %v1555_v29, %v1555_v29 }
 0x56a   :  { %v1557_v31 = vsel %vm1549_vm1, %v1556_v30, 0.0 }
 0x56b   :  { %1558 = vadd.xlane.f32.xlu0 %v1557_v31 }
 0x5f8   :  { %v1559_v34 = vpop.xlane.xlu0 %1558 }
 0x5f9   :  { %v1560_v35 = vmul.f32 0.03125, %v1559_v34 }
 0x5fb   :  { %v1561_v36 = vadd.f32 1e-05, %v1560_v35  ;;  %v4643_v35 = vld [vmem:[%s4839_s17 + $0x18] sm:$0xff] }
 0x5fd   :  { %3939 = vrsqrt.f32 %v1561_v36 }
 0x607   :  { %v3940_v37 = vpop.eup %3939 }
 0x608   :  { %v1563_v39 = vmul.f32 %v3940_v37, %v1555_v29 }
 0x60a   :  { %v1570_v41 = vmul.f32 %v3228_v38, %v1563_v39 }
 0x60c   :  { %v1577_v42 = vadd.f32 %v3229_v40, %v1570_v41 }
 0x60e   :  { %v1582_v44 = vpack.c.bf16 %v1577_v42, %v1577_v42 }
 0x610   :  { %3471 = vmatmul.mubr.msk.bf16.vlgmr.msra.gmra.mrb[12].mxu1 %vm1549_vm1, %v1582_v44 }
 0x611   :  { %3475 = vmatpush3.bf16.msra.mxu1 %v3903_v43  ;;  %3478 = vmatprep.mubr.msk.bf16.mxu1 %vm4265_vm0, %v4264_v54 }
 0x612   :  { %3476 = vmatprep.subr.bf16.mxu1 %v4264_v54 }
 0x615   :  { %3477 = vmatpush3.bf16.msra.mxu1 %v3904_v45 }
 0x616   :  { %3482 = vmatprep.subr.bf16.mxu1 %v4264_v54 }
 0x618   :  { %3479 = vmatmul.mubr.msk.bf16.vlgmr.msra.gmra.mrb[16].mxu1 %vm1549_vm1, %v1582_v44 }
 0x619   :  { %3483 = vmatpush3.bf16.msra.mxu1 %v3905_v46  ;;  %3486 = vmatprep.mubr.msk.bf16.mxu1 %vm4265_vm0, %v4264_v54 }
 0x61a   :  { %3484 = vmatprep.subr.bf16.mxu1 %v4264_v54 }
 0x61d   :  { %3485 = vmatpush3.bf16.msra.mxu1 %v3906_v47 }
 0x620   :  { %3487 = vmatmul.mubr.msk.bf16.vlgmr.msra.gmra.mrb[20].mxu1 %vm1549_vm1, %v1582_v44 }
 0x6e3   :  { %v1639_v49 = vpop.f32.mrb[12].mxu1 }
 0x6e4   :  { %v1640_v52 = vadd.f32 %v3230_v48, %v1639_v49  ;;  %v3472_v55 = vpop.f32.mrb[13].mxu1 }
 0x6e5   :  { %v1642_v56 = vpop.f32.mrb[14].mxu1 }
 0x6e6   :  { %v1779_v57 = vpack.c.bf16 %v1640_v52, %v1640_v52  ;;  %v3473_v58 = vpop.f32.mrb[15].mxu1 }
 0x6e8   :  { %3494 = vmatprep.mubr.msk.bf16.mxu1 %vm1549_vm1, %v1779_v57 }
 0x6eb   :  { %v1702_v0 = vpop.f32.mrb[16].mxu1 }
 0x6ec   :  { %v1703_v1 = vadd.f32 %v3234_v59, %v1702_v0  ;;  %v3480_v2 = vpop.f32.mrb[17].mxu1 }
 0x6ed   :  { %v1705_v3 = vpop.f32.mrb[18].mxu1 }
 0x6ee   :  { %v1771_v4 = vmul.f32 %v1703_v1, %v4603_v60  ;;  %v1772_v50 = vmul.f32 %v1703_v1, %v4606_v61  ;;  %v1773_v51 = vmul.f32 %v1703_v1, %v4609_v62  ;;  %v1774_v53 = vmul.f32 %v1703_v1, %v4612_v63  ;;  %v3481_v5 = vpop.f32.mrb[19].mxu1 }
 0x6f0   :  { %v1780_v6 = vpack.c.bf16 %v1772_v50, %v1771_v4  ;;  %v1781_v9 = vpack.c.bf16 %v1774_v53, %v1773_v51 }
 0x6f2   :  { %3632 = vmatprep.subr.msk.bf16.mxu1 %vm1549_vm1, %v1780_v6  ;;  %v1786_v8 = vsel %vm1549_vm1, %v1780_v6, 0  ;;  %v1789_v17 = vsel %vm1549_vm1, %v1781_v9, 0 }
 0x6f3   :  { %v1765_v10 = vpop.f32.mrb[20].mxu1  ;;  %3491 = vmatpush3.bf16.xpose.msra.mxu1 %v1786_v8 }
 0x6f4   :  { %v1766_v11 = vadd.f32 %v3238_v7, %v1765_v10  ;;  %v3488_v12 = vpop.f32.mrb[21].mxu1  ;;  %3633 = vmatprep.subr.msk.bf16.mxu1 %vm1549_vm1, %v1781_v9 }
 0x6f5   :  { %v1768_v13 = vpop.f32.mrb[22].mxu1 }
 0x6f6   :  { %v3489_v14 = vpop.f32.mrb[23].mxu1  ;;  %v1775_v15 = vmul.f32 %v1766_v11, %v4603_v60  ;;  %v1776_v16 = vmul.f32 %v1766_v11, %v4606_v61  ;;  %v1777_v19 = vmul.f32 %v1766_v11, %v4609_v62  ;;  %v1778_v20 = vmul.f32 %v1766_v11, %v4612_v63 }
 0x6f7   :  { %v3907_v14 = vld [vmem:[%s4840_s22] sm:$0xff]  }
 0x6f8   :  { %v1886_v18 = vpack.c.bf16 %v1776_v16, %v1775_v15  ;;  %v1887_v21 = vpack.c.bf16 %v1778_v20, %v1777_v19  ;;  %v3908_v15 = vld [vmem:[%s4840_s22 + $0x8] sm:$0xff]  }
 0x6fb   :  { %3493 = vmatpush3.bf16.xpose.msra.mxu1 %v1789_v17 }
 0x6fc   :  { %3498 = vmatprep.subr.bf16.mxu1 %v1886_v18 }
 0x702   :  { %3495 = vmatmul.mubr.msk.bf16.vlgmr.msra.gmra.mrb[24].mxu1 %vm1549_vm1, %v1779_v57 }
 0x703   :  { %3499 = vmatpush3.bf16.msra.mxu1 %v1886_v18 }
 0x704   :  { %3500 = vmatprep.subr.bf16.mxu1 %v1887_v21 }
 0x707   :  { %3501 = vmatpush3.bf16.msra.mxu1 %v1887_v21 }
 0x708   :  { %3506 = vmatprep.subr.bf16.mxu1 %v4264_v54 }
 0x7d5   :  { %v3496_v25 = vpop.f32.mrb[24].mxu1 }
 0x7d6   :  { %v1834_v26 = vadd.f32 %v3496_v25, %v4629_v22  ;;  %v1825_v27 = vpop.f32.mrb[25].mxu1 }
 0x7d7   :  { %v1826_v29 = vadd.f32 %v1825_v27, %v4632_v23  ;;  %v3497_v30 = vpop.f32.mrb[26].mxu1 }
 0x7d8   :  { %v1828_v31 = vpop.f32.mrb[27].mxu1  ;;  %v1846_v32 = vsel %vm1549_vm1, %v1834_v26, -inf  ;;  %v1837_v36 = vadd.f32 %v3497_v30, %v4643_v35 }
 0x7d9   :  { %v1829_v33 = vadd.f32 %v1828_v31, %v4636_v28  ;;  %1847 = vmax.xlane.f32.xlu0 %v1846_v32  ;;  %v1840_v34 = vsel %vm1549_vm1, %v1826_v29, -inf }
 0x7da   :  { %1841 = vmax.xlane.f32.xlu1 %v1840_v34  ;;  %v1849_v38 = vsel %vm1549_vm1, %v1837_v36, -inf }
 0x7db   :  { %v1843_v37 = vsel %vm1549_vm1, %v1829_v33, -inf }
 0x7de   :  { %1844 = vmax.xlane.f32.xlu1 %v1843_v37 }
 0x7e2   :  { %1850 = vmax.xlane.f32.xlu1 %v1849_v38 }
 0x866   :  { %v1848_v39 = vpop.xlane.xlu0 %1847 }
 0x867   :  { %v1854_v40 = vsub.f32 %v1834_v26, %v1848_v39  ;;  %v1842_v41 = vpop.xlane.xlu1 %1841 }
 0x868   :  { %v1852_v42 = vsub.f32 %v1826_v29, %v1842_v41  ;;  %v3249_v29 = vld [vmem:[#allocation12] ss:$0 sm:$0xff] }
 0x869   :  { %v1860_v43 = vmul.f32 1.442695, %v1854_v40 }
 0x86a   :  { %v1856_v44 = vmul.f32 1.442695, %v1852_v42  ;;  %v3910_v42 = vld [vmem:[%s4841_s23 + $0x8] sm:$0xff]  }
 0x86b   :  { %v1845_v45 = vpop.xlane.xlu1 %1844 }
 0x86c   :  { %3941 = vpow2.f32 %v1856_v44  ;;  %v1853_v46 = vsub.f32 %v1829_v33, %v1845_v45 }
 0x86d   :  { %3943 = vpow2.f32 %v1860_v43 }
 0x86e   :  { %v1858_v47 = vmul.f32 1.442695, %v1853_v46 }
 0x86f   :  { %v1851_v48 = vpop.xlane.xlu1 %1850 }
 0x870   :  { %3945 = vpow2.f32 %v1858_v47  ;;  %v1855_v49 = vsub.f32 %v1837_v36, %v1851_v48  ;;  %v3250_v47 = vld [vmem:[%s4842_s28] ss:$0 sm:$0xff] }
 0x872   :  { %v1862_v52 = vmul.f32 1.442695, %v1855_v49  ;;  %v3251_v49 = vld [vmem:[%s4843_s1] ss:$0 sm:$0xff] }
 0x874   :  { %3947 = vpow2.f32 %v1862_v52 }
 0x876   :  { %v3942_v55 = vpop.eup %3941 }
 0x877   :  { %v1864_v56 = vsel %vm1549_vm1, %v3942_v55, 0.0  ;;  %v3944_v57 = vpop.eup %3943 }
 0x878   :  { %1865 = vadd.xlane.f32.xlu0 %v1864_v56  ;;  %v1870_v59 = vsel %vm1549_vm1, %v3944_v57, 0.0 }
 0x87a   :  { %v3946_v58 = vpop.eup %3945 }
 0x87b   :  { %v1867_v0 = vsel %vm1549_vm1, %v3946_v58, 0.0 }
 0x87c   :  { %1871 = vadd.xlane.f32.xlu0 %v1870_v59  ;;  %1868 = vadd.xlane.f32.xlu1 %v1867_v0  ;;  %v3913_v59 = vld [vmem:[%s4844_s9 + $0x10] sm:$0xff]   ;;  %v3914_v0 = vld [vmem:[%s4844_s9 + $0x18] sm:$0xff]  }
 0x87e   :  { %v3948_v1 = vpop.eup %3947 }
 0x87f   :  { %v1873_v2 = vsel %vm1549_vm1, %v3948_v1, 0.0 }
 0x880   :  { %1874 = vadd.xlane.f32.xlu1 %v1873_v2  ;;  %v3916_v2 = vld [vmem:[%s4844_s9 + $0x28] sm:$0xff]  }
 0x905   :  { %v1866_v3 = vpop.xlane.xlu0 %1865 }
 0x906   :  { %3949 = vrcp.f32 %v1866_v3  ;;  %v3917_v3 = vld [vmem:[%s4844_s9 + $0x30] sm:$0xff]  }
 0x909   :  { %v1872_v4 = vpop.xlane.xlu0 %1871  ;;  %v1869_v50 = vpop.xlane.xlu1 %1868 }
 0x90a   :  { %3951 = vrcp.f32 %v1869_v50  ;;  %v3252_v50 = vld [vmem:[#allocation13] ss:$0 sm:$0xff] }
 0x90b   :  { %3953 = vrcp.f32 %v1872_v4  ;;  %v3918_v4 = vld [vmem:[%s4844_s9 + $0x38] sm:$0xff]  }
 0x90d   :  { %v1875_v51 = vpop.xlane.xlu1 %1874 }
 0x90e   :  { %3955 = vrcp.f32 %v1875_v51 }
 0x910   :  { %v3950_v53 = vpop.eup %3949 }
 0x911   :  { %v1880_v7 = vmul.f32 %v3950_v53, %v3942_v55 }
 0x914   :  { %v3952_v5 = vpop.eup %3951 }
 0x915   :  { %v3954_v6 = vpop.eup %3953  ;;  %v1881_v8 = vmul.f32 %v3952_v5, %v3946_v58  ;;  %v3912_v58 = vld [vmem:[%s4844_s9 + $0x8] sm:$0xff]  }
 0x916   :  { %v1882_v11 = vmul.f32 %v3954_v6, %v3944_v57  ;;  %v3911_v57 = vld [vmem:[%s4844_s9] sm:$0xff]  }
 0x917   :  { %v1884_v10 = vpack.c.bf16 %v1881_v8, %v1880_v7  ;;  %3523 = vmatpush3.bf16.msra.mxu0 %v3911_v57 }
 0x918   :  { %v3956_v9 = vpop.eup %3955  ;;  %3524 = vmatprep.subr.bf16.mxu0 %v4264_v54 }
 0x919   :  { %v1883_v12 = vmul.f32 %v3956_v9, %v3948_v1  ;;  %3502 = vmatprep.mubr.msk.bf16.mxu1 %vm1549_vm1, %v1884_v10  ;;  %v3915_v1 = vld [vmem:[%s4844_s9 + $0x20] sm:$0xff]  }
 0x91b   :  { %v1885_v13 = vpack.c.bf16 %v1883_v12, %v1882_v11  ;;  %3525 = vmatpush3.bf16.msra.mxu0 %v3912_v58 }
 0x91c   :  { %3526 = vmatprep.subr.bf16.mxu0 %v4264_v54 }
 0x91d   :  { %3503 = vmatmul.mubr.msk.bf16.vlgmr.msra.gmra.mrb[28].mxu1 %vm1549_vm1, %v1885_v13 }
 0x91e   :  { %3510 = vmatprep.mubr.msk.bf16.mxu1 %vm4265_vm0, %v4264_v54  ;;  %3507 = vmatpush3.bf16.msra.mxu1 %v3907_v14 }
 0x91f   :  { %3508 = vmatprep.subr.bf16.mxu1 %v4264_v54  ;;  %3527 = vmatpush3.bf16.msra.mxu0 %v3913_v59 }
 0x920   :  { %3528 = vmatprep.subr.bf16.mxu0 %v4264_v54 }
 0x922   :  { %3509 = vmatpush3.bf16.msra.mxu1 %v3908_v15 }
 0x923   :  { %3514 = vmatprep.subr.bf16.mxu1 %v4264_v54  ;;  %3529 = vmatpush3.bf16.msra.mxu0 %v3914_v0 }
 0x924   :  { %3530 = vmatprep.subr.bf16.mxu0 %v4264_v54 }
 0x927   :  { %3531 = vmatpush3.bf16.msra.mxu0 %v3915_v1 }
 0x928   :  { %3532 = vmatprep.subr.bf16.mxu0 %v4264_v54 }
 0x92b   :  { %3533 = vmatpush3.bf16.msra.mxu0 %v3916_v2  ;;  %v3281_v2 = vld [vmem:[#allocation9 + $0x1] ss:$0 sm:$0xff] }
 0x92c   :  { %3534 = vmatprep.subr.bf16.mxu0 %v4264_v54 }
 0x92f   :  { %3535 = vmatpush3.bf16.msra.mxu0 %v3917_v3 }
 0x930   :  { %3536 = vmatprep.subr.bf16.mxu0 %v4264_v54 }
 0x933   :  { %3537 = vmatpush3.bf16.msra.mxu0 %v3918_v4 }
 0x934   :  { %3582 = vmatprep.subr.bf16.mxu0 %v4264_v54 }
 0x9f0   :  { %v3504_v16 = vpop.f32.mrb[28].mxu1 }
 0x9f1   :  { %v1928_v17 = vpop.f32.mrb[29].mxu1 }
 0x9f2   :  { %v3505_v18 = vpop.f32.mrb[30].mxu1 }
 0x9f3   :  { %v1931_v19 = vpop.f32.mrb[31].mxu1 }
 0x9f4   :  { %v1943_v20 = vadd.f32 %v1931_v19, %v1928_v17  ;;  %v3264_v19 = vld [vmem:[#allocation15] ss:$0 sm:$0xff] }
 0x9f6   :  { %v1944_v21 = vadd.f32 %v3504_v16, %v1943_v20 }
 0x9f8   :  { %v1945_v25 = vadd.f32 %v3505_v18, %v1944_v21 }
 0x9fa   :  { %v1950_v26 = vpack.c.bf16 %v1945_v25, %v1945_v25 }
 0x9fc   :  { %3511 = vmatmul.mubr.msk.bf16.vlgmr.msra.gmra.mrb[32].mxu1 %vm1549_vm1, %v1950_v26 }
 0x9fd   :  { %3518 = vmatprep.mubr.msk.bf16.mxu1 %vm4265_vm0, %v4264_v54 }
 0xacf   :  { %v2000_v27 = vpop.f32.mrb[32].mxu1 }
 0xad0   :  { %v2006_v30 = vadd.f32 %v2000_v27, %v4575_v24  ;;  %v3512_v31 = vpop.f32.mrb[33].mxu1  ;;  %v3909_v24 = vld [vmem:[%s4841_s23] sm:$0xff]  }
 0xad1   :  { %v2003_v32 = vpop.f32.mrb[34].mxu1  ;;  %3515 = vmatpush3.bf16.msra.mxu1 %v3909_v24  ;;  %v3267_v24 = vld [vmem:[%s4834_s29 + $0x1] ss:$0 sm:$0xff] }
 0xad2   :  { %v4664_v33 = vadd.f32 %v3249_v29, %v2006_v30  ;;  %v3513_v34 = vpop.f32.mrb[35].mxu1  ;;  %3516 = vmatprep.subr.bf16.mxu1 %v4264_v54 }
 0xad4   :  { %v2017_v36 = vsel %vm1549_vm1, %v4664_v33, 0.0 }
 0xad5   :  { %2018 = vadd.xlane.f32.xlu0 %v2017_v36  ;;  %3517 = vmatpush3.bf16.msra.mxu1 %v3910_v42 }
 0xad6   :  { %3542 = vmatprep.subr.bf16.mxu1 %v4264_v54 }
 0xb62   :  { %v2019_v37 = vpop.xlane.xlu0 %2018 }
 0xb63   :  { %v2020_v38 = vmul.f32 0.03125, %v2019_v37  ;;  %v3920_v37 = vld [vmem:[%s4833_s25 + $0x18] sm:$0xff]  }
 0xb65   :  { %v2021_v39 = vsub.f32 %v4664_v33, %v2020_v38 }
 0xb67   :  { %v2022_v40 = vmul.f32 %v2021_v39, %v2021_v39 }
 0xb69   :  { %v2023_v41 = vsel %vm1549_vm1, %v2022_v40, 0.0 }
 0xb6a   :  { %2024 = vadd.xlane.f32.xlu1 %v2023_v41 }
 0xbf7   :  { %v2025_v43 = vpop.xlane.xlu1 %2024 }
 0xbf8   :  { %v2026_v44 = vmul.f32 0.03125, %v2025_v43  ;;  %v3268_v43 = vld [vmem:[%s4835_s3 + $0x1] ss:$0 sm:$0xff] }
 0xbfa   :  { %v2027_v45 = vadd.f32 1e-05, %v2026_v44 }
 0xbfc   :  { %3957 = vrsqrt.f32 %v2027_v45 }
 0xc06   :  { %v3958_v46 = vpop.eup %3957 }
 0xc07   :  { %v2029_v48 = vmul.f32 %v3958_v46, %v2021_v39  ;;  %v3921_v46 = vld [vmem:[%s4836_s8 + $0x10] sm:$0xff]  }
 0xc09   :  { %v2036_v52 = vmul.f32 %v3250_v47, %v2029_v48  ;;  %v3922_v48 = vld [vmem:[%s4836_s8 + $0x18] sm:$0xff]  }
 0xc0b   :  { %v2043_v55 = vadd.f32 %v3251_v49, %v2036_v52  ;;  %v3923_v49 = vld [vmem:[%s4837_s30 + $0x10] sm:$0xff]   ;;  %v3924_v52 = vld [vmem:[%s4837_s30 + $0x18] sm:$0xff]  }
 0xc0d   :  { %v2048_v56 = vpack.c.bf16 %v2043_v55, %v2043_v55  ;;  %v3273_v55 = vld [vmem:[#allocation7 + $0x1] ss:$0 sm:$0xff] }
 0xc0f   :  { %3519 = vmatmul.mubr.msk.bf16.vlgmr.msra.gmra.mrb[36].mxu1 %vm1549_vm1, %v2048_v56 }
 0xc10   :  { %3546 = vmatprep.mubr.msk.bf16.mxu1 %vm4265_vm0, %v4264_v54 }
 0xce2   :  { %v2105_v51 = vpop.f32.mrb[36].mxu1 }
 0xce3   :  { %v2106_v53 = vadd.f32 %v3252_v50, %v2105_v51  ;;  %v3520_v5 = vpop.f32.mrb[37].mxu1 }
 0xce4   :  { %v2108_v6 = vpop.f32.mrb[38].mxu1 }
 0xce5   :  { %v2111_v7 = vmul.f32 %v2106_v53, %v2106_v53  ;;  %v3521_v8 = vpop.f32.mrb[39].mxu1 }
 0xce7   :  { %v2112_v9 = vmul.f32 %v2111_v7, %v2106_v53 }
 0xce9   :  { %v2113_v10 = vmul.f32 0.044715, %v2112_v9 }
 0xceb   :  { %v2114_v11 = vadd.f32 %v2113_v10, %v2106_v53  ;;  %v3289_v10 = vld [vmem:[#allocation10 + $0x1] ss:$0 sm:$0xff] }
 0xced   :  { %v2115_v12 = vmul.f32 0.7978846, %v2114_v11 }
 0xcef   :  { %3959 = vtanh.f32 %v2115_v12 }
 0xcf9   :  { %v3960_v13 = vpop.eup %3959 }
 0xcfa   :  { %v2117_v14 = vadd.f32 1.0, %v3960_v13 }
 0xcfc   :  { %v2118_v15 = vmul.f32 0.5, %v2117_v14 }
 0xcfe   :  { %v2119_v16 = vmul.f32 %v2118_v15, %v2106_v53 }
 0xd00   :  { %v2136_v17 = vpack.c.bf16 %v2119_v16, %v2119_v16 }
 0xd02   :  { %3539 = vmatmul.mubr.bf16.vlgmr.msra.gmra.mrb[8].mxu0 %v2136_v17 }
 0xd03   :  { %3586 = vmatprep.mubr.msk.bf16.mxu0 %vm4265_vm0, %v4264_v54 }
 0xdd5   :  { %v2219_v18 = vpop.f32.mrb[8].mxu0 }
 0xdd6   :  { %v2225_v20 = vadd.f32 %v2219_v18, %v4664_v33  ;;  %v3540_v21 = vpop.f32.mrb[9].mxu0  ;;  %v3919_v33 = vld [vmem:[%s4833_s25 + $0x10] sm:$0xff]  }
 0xdd7   :  { %v2222_v25 = vpop.f32.mrb[10].mxu0  ;;  %3543 = vmatpush3.bf16.msra.mxu1 %v3919_v33 }
 0xdd8   :  { %v4698_v26 = vadd.f32 %v3264_v19, %v2225_v20  ;;  %v3541_v27 = vpop.f32.mrb[11].mxu0  ;;  %3544 = vmatprep.subr.bf16.mxu1 %v4264_v54 }
 0xdda   :  { %v2238_v29 = vsel %vm1549_vm1, %v4698_v26, 0.0 }
 0xddb   :  { %2239 = vadd.xlane.f32.xlu0 %v2238_v29  ;;  %3545 = vmatpush3.bf16.msra.mxu1 %v3920_v37 }
 0xddc   :  { %3550 = vmatprep.subr.bf16.mxu1 %v4264_v54 }
 0xe68   :  { %v2240_v30 = vpop.xlane.xlu0 %2239 }
 0xe69   :  { %v2241_v31 = vmul.f32 0.03125, %v2240_v30 }
 0xe6b   :  { %v2242_v32 = vsub.f32 %v4698_v26, %v2241_v31 }
 0xe6d   :  { %v2243_v34 = vmul.f32 %v2242_v32, %v2242_v32 }
 0xe6f   :  { %v2244_v36 = vsel %vm1549_vm1, %v2243_v34, 0.0 }
 0xe70   :  { %2245 = vadd.xlane.f32.xlu1 %v2244_v36 }
 0xefd   :  { %v2246_v38 = vpop.xlane.xlu1 %2245 }
 0xefe   :  { %v2247_v39 = vmul.f32 0.03125, %v2246_v38 }
 0xf00   :  { %v2248_v40 = vadd.f32 1e-05, %v2247_v39 }
 0xf02   :  { %3961 = vrsqrt.f32 %v2248_v40 }
 0xf0c   :  { %v3962_v41 = vpop.eup %3961 }
 0xf0d   :  { %v2250_v42 = vmul.f32 %v3962_v41, %v2242_v32 }
 0xf0f   :  { %v2257_v44 = vmul.f32 %v3267_v24, %v2250_v42 }
 0xf11   :  { %v2264_v45 = vadd.f32 %v3268_v43, %v2257_v44 }
 0xf13   :  { %v2270_v47 = vpack.c.bf16 %v2264_v45, %v2264_v45 }
 0xf15   :  { %3547 = vmatmul.mubr.msk.bf16.vlgmr.msra.gmra.mrb[40].mxu1 %vm1549_vm1, %v2270_v47 }
 0xf16   :  { %3551 = vmatpush3.bf16.msra.mxu1 %v3921_v46  ;;  %3554 = vmatprep.mubr.msk.bf16.mxu1 %vm4265_vm0, %v4264_v54 }
 0xf17   :  { %3552 = vmatprep.subr.bf16.mxu1 %v4264_v54 }
 0xf1a   :  { %3553 = vmatpush3.bf16.msra.mxu1 %v3922_v48 }
 0xf1b   :  { %3558 = vmatprep.subr.bf16.mxu1 %v4264_v54 }
 0xf1d   :  { %3555 = vmatmul.mubr.msk.bf16.vlgmr.msra.gmra.mrb[44].mxu1 %vm1549_vm1, %v2270_v47 }
 0xf1e   :  { %3559 = vmatpush3.bf16.msra.mxu1 %v3923_v49  ;;  %3562 = vmatprep.mubr.msk.bf16.mxu1 %vm4265_vm0, %v4264_v54 }
 0xf1f   :  { %3560 = vmatprep.subr.bf16.mxu1 %v4264_v54 }
 0xf22   :  { %3561 = vmatpush3.bf16.msra.mxu1 %v3924_v52 }
 0xf25   :  { %3563 = vmatmul.mubr.msk.bf16.vlgmr.msra.gmra.mrb[48].mxu1 %vm1549_vm1, %v2270_v47 }
 0xfe8   :  { %v2328_v56 = vpop.f32.mrb[40].mxu1 }
 0xfe9   :  { %v2329_v57 = vadd.f32 %v3273_v55, %v2328_v56  ;;  %v3548_v58 = vpop.f32.mrb[41].mxu1 }
 0xfea   :  { %v2331_v59 = vpop.f32.mrb[42].mxu1 }
 0xfeb   :  { %v2472_v0 = vpack.c.bf16 %v2329_v57, %v2329_v57  ;;  %v3549_v1 = vpop.f32.mrb[43].mxu1 }
 0xfed   :  { %3570 = vmatprep.mubr.msk.bf16.mxu1 %vm1549_vm1, %v2472_v0 }
 0xff0   :  { %v2393_v3 = vpop.f32.mrb[44].mxu1 }
 0xff1   :  { %v2394_v4 = vadd.f32 %v3281_v2, %v2393_v3  ;;  %v3556_v50 = vpop.f32.mrb[45].mxu1 }
 0xff2   :  { %v2396_v51 = vpop.f32.mrb[46].mxu1 }
 0xff3   :  { %v2464_v53 = vmul.f32 %v2394_v4, %v4603_v60  ;;  %v2465_v5 = vmul.f32 %v2394_v4, %v4606_v61  ;;  %v2466_v6 = vmul.f32 %v2394_v4, %v4609_v62  ;;  %v2467_v7 = vmul.f32 %v2394_v4, %v4612_v63  ;;  %v3557_v8 = vpop.f32.mrb[47].mxu1 }
 0xff5   :  { %v2473_v9 = vpack.c.bf16 %v2465_v5, %v2464_v53  ;;  %v2474_v12 = vpack.c.bf16 %v2467_v7, %v2466_v6 }
 0xff7   :  { %3634 = vmatprep.subr.msk.bf16.mxu1 %vm1549_vm1, %v2473_v9  ;;  %v2479_v11 = vsel %vm1549_vm1, %v2473_v9, 0  ;;  %v2482_v20 = vsel %vm1549_vm1, %v2474_v12, 0  ;;  %v3925_v9 = vld [vmem:[%s4840_s22 + $0x10] sm:$0xff]  }
 0xff8   :  { %v2458_v13 = vpop.f32.mrb[48].mxu1  ;;  %3567 = vmatpush3.bf16.xpose.msra.mxu1 %v2479_v11  ;;  %3583 = vmatpush3.bf16.msra.mxu0 %v3925_v9 }
 0xff9   :  { %v2459_v14 = vadd.f32 %v3289_v10, %v2458_v13  ;;  %v3564_v15 = vpop.f32.mrb[49].mxu1  ;;  %3635 = vmatprep.subr.msk.bf16.mxu1 %vm1549_vm1, %v2474_v12  ;;  %3584 = vmatprep.subr.bf16.mxu0 %v4264_v54  ;;  %v3926_v10 = vld [vmem:[%s4840_s22 + $0x18] sm:$0xff]  }
 0xffa   :  { %v2461_v16 = vpop.f32.mrb[50].mxu1 }
 0xffb   :  { %v3565_v17 = vpop.f32.mrb[51].mxu1  ;;  %v2468_v18 = vmul.f32 %v2459_v14, %v4603_v60  ;;  %v2469_v19 = vmul.f32 %v2459_v14, %v4606_v61  ;;  %v2470_v25 = vmul.f32 %v2459_v14, %v4609_v62  ;;  %v2471_v27 = vmul.f32 %v2459_v14, %v4612_v63 }
 0xffc   :  { %3585 = vmatpush3.bf16.msra.mxu0 %v3926_v10 }
 0xffd   :  { %v2579_v21 = vpack.c.bf16 %v2469_v19, %v2468_v18  ;;  %v2580_v29 = vpack.c.bf16 %v2471_v27, %v2470_v25  ;;  %3598 = vmatprep.subr.bf16.mxu0 %v4264_v54 }
0x1000   :  { %3569 = vmatpush3.bf16.xpose.msra.mxu1 %v2482_v20  ;;  %v3304_v20 = vld [vmem:[#allocation12 + $0x1] ss:$0 sm:$0xff] }
0x1001   :  { %3574 = vmatprep.subr.bf16.mxu1 %v2579_v21 }
0x1007   :  { %3571 = vmatmul.mubr.msk.bf16.vlgmr.msra.gmra.mrb[52].mxu1 %vm1549_vm1, %v2472_v0 }
0x1008   :  { %3575 = vmatpush3.bf16.msra.mxu1 %v2579_v21 }
0x1009   :  { %3576 = vmatprep.subr.bf16.mxu1 %v2580_v29 }
0x100c   :  { %3577 = vmatpush3.bf16.msra.mxu1 %v2580_v29 }
0x100d   :  { %3590 = vmatprep.subr.bf16.mxu1 %v4264_v54 }
0x10da   :  { %v3572_v60 = vpop.f32.mrb[52].mxu1 }
0x10db   :  { %v2518_v30 = vpop.f32.mrb[53].mxu1  ;;  %v2527_v34 = vadd.f32 %v3572_v60, %v4629_v22 }
0x10dc   :  { %v2519_v61 = vadd.f32 %v2518_v30, %v4632_v23  ;;  %v3573_v31 = vpop.f32.mrb[54].mxu1 }
0x10dd   :  { %v2521_v32 = vpop.f32.mrb[55].mxu1  ;;  %v2530_v36 = vadd.f32 %v3573_v31, %v4643_v35  ;;  %v2539_v37 = vsel %vm1549_vm1, %v2527_v34, -inf }
0x10de   :  { %v2522_v62 = vadd.f32 %v2521_v32, %v4636_v28  ;;  %v2533_v63 = vsel %vm1549_vm1, %v2519_v61, -inf }
0x10df   :  { %2534 = vmax.xlane.f32.xlu0 %v2533_v63  ;;  %v2542_v38 = vsel %vm1549_vm1, %v2530_v36, -inf  ;;  %v3928_v63 = vld [vmem:[%s4841_s23 + $0x18] sm:$0xff]  }
0x10e0   :  { %v2536_v33 = vsel %vm1549_vm1, %v2522_v62, -inf }
0x10e1   :  { %2537 = vmax.xlane.f32.xlu1 %v2536_v33 }
0x10e3   :  { %2540 = vmax.xlane.f32.xlu0 %v2539_v37 }
0x10e5   :  { %2543 = vmax.xlane.f32.xlu1 %v2542_v38 }
0x116c   :  { %v2535_v23 = vpop.xlane.xlu0 %2534 }
0x116d   :  { %v2545_v39 = vsub.f32 %v2519_v61, %v2535_v23  ;;  %v3307_v23 = vld [vmem:[%s4842_s28 + $0x1] ss:$0 sm:$0xff] }
0x116e   :  { %v2538_v40 = vpop.xlane.xlu1 %2537 }
0x116f   :  { %v2549_v22 = vmul.f32 1.442695, %v2545_v39  ;;  %v2546_v41 = vsub.f32 %v2522_v62, %v2538_v40  ;;  %v3308_v40 = vld [vmem:[%s4843_s1 + $0x1] ss:$0 sm:$0xff] }
0x1170   :  { %v2541_v28 = vpop.xlane.xlu0 %2540 }
0x1171   :  { %3963 = vpow2.f32 %v2549_v22  ;;  %v2551_v24 = vmul.f32 1.442695, %v2546_v41  ;;  %v2547_v42 = vsub.f32 %v2527_v34, %v2541_v28 }
0x1172   :  { %v2544_v43 = vpop.xlane.xlu1 %2543 }
0x1173   :  { %3965 = vpow2.f32 %v2551_v24  ;;  %v2553_v35 = vmul.f32 1.442695, %v2547_v42  ;;  %v2548_v44 = vsub.f32 %v2530_v36, %v2544_v43  ;;  %v3929_v24 = vld [vmem:[%s4844_s9 + $0x40] sm:$0xff]   ;;  %v3930_v42 = vld [vmem:[%s4844_s9 + $0x48] sm:$0xff]   ;;  %v3931_v43 = vld [vmem:[%s4844_s9 + $0x50] sm:$0xff]  }
0x1175   :  { %3967 = vpow2.f32 %v2553_v35  ;;  %v2555_v45 = vmul.f32 1.442695, %v2548_v44  ;;  %v3932_v35 = vld [vmem:[%s4844_s9 + $0x58] sm:$0xff]   ;;  %v3933_v44 = vld [vmem:[%s4844_s9 + $0x60] sm:$0xff]  }
0x1177   :  { %3969 = vpow2.f32 %v2555_v45  ;;  %v3934_v45 = vld [vmem:[%s4844_s9 + $0x68] sm:$0xff]  }
0x117b   :  { %v3964_v46 = vpop.eup %3963 }
0x117c   :  { %v2557_v47 = vsel %vm1549_vm1, %v3964_v46, 0.0 }
0x117d   :  { %v3966_v48 = vpop.eup %3965  ;;  %2558 = vadd.xlane.f32.xlu0 %v2557_v47  ;;  %v3936_v47 = vld [vmem:[%s4844_s9 + $0x78] sm:$0xff]  }
0x117e   :  { %v2560_v49 = vsel %vm1549_vm1, %v3966_v48, 0.0 }
0x117f   :  { %v3968_v52 = vpop.eup %3967  ;;  %2561 = vadd.xlane.f32.xlu1 %v2560_v49 }
0x1180   :  { %v2563_v55 = vsel %vm1549_vm1, %v3968_v52, 0.0 }
0x1181   :  { %v3970_v56 = vpop.eup %3969  ;;  %2564 = vadd.xlane.f32.xlu0 %v2563_v55 }
0x1182   :  { %v2566_v57 = vsel %vm1549_vm1, %v3970_v56, 0.0 }
0x1183   :  { %2567 = vadd.xlane.f32.xlu1 %v2566_v57 }
0x120a   :  { %v2559_v58 = vpop.xlane.xlu0 %2558 }
0x120b   :  { %3971 = vrcp.f32 %v2559_v58 }
0x120c   :  { %v2562_v59 = vpop.xlane.xlu1 %2561 }
0x120d   :  { %3973 = vrcp.f32 %v2562_v59 }
0x120e   :  { %v2565_v0 = vpop.xlane.xlu0 %2564 }
0x120f   :  { %3975 = vrcp.f32 %v2565_v0 }
0x1210   :  { %v2568_v1 = vpop.xlane.xlu1 %2567 }
0x1211   :  { %3977 = vrcp.f32 %v2568_v1 }
0x1215   :  { %v3972_v2 = vpop.eup %3971 }
0x1216   :  { %v2573_v4 = vmul.f32 %v3972_v2, %v3964_v46  ;;  %v3935_v46 = vld [vmem:[%s4844_s9 + $0x70] sm:$0xff]  }
0x1217   :  { %v3974_v3 = vpop.eup %3973 }
0x1218   :  { %v2574_v50 = vmul.f32 %v3974_v3, %v3966_v48  ;;  %v3313_v48 = vld [vmem:[#allocation13 + $0x1] ss:$0 sm:$0xff] }
0x1219   :  { %v3976_v51 = vpop.eup %3975 }
0x121a   :  { %v2577_v53 = vpack.c.bf16 %v2574_v50, %v2573_v4  ;;  %v2575_v6 = vmul.f32 %v3976_v51, %v3968_v52 }
0x121b   :  { %v3978_v5 = vpop.eup %3977 }
0x121c   :  { %v2576_v7 = vmul.f32 %v3978_v5, %v3970_v56  ;;  %3578 = vmatprep.mubr.msk.bf16.mxu1 %vm1549_vm1, %v2577_v53 }
0x121e   :  { %v2578_v8 = vpack.c.bf16 %v2576_v7, %v2575_v6  ;;  %v3341_v6 = vld [vmem:[#allocation15 + $0x1] ss:$0 sm:$0xff] }
0x1220   :  { %3579 = vmatmul.mubr.msk.bf16.vlgmr.msra.gmra.mrb[56].mxu1 %vm1549_vm1, %v2578_v8 }
0x1221   :  { %3594 = vmatprep.mubr.msk.bf16.mxu1 %vm4265_vm0, %v4264_v54 }
0x12f3   :  { %v3580_v11 = vpop.f32.mrb[56].mxu1 }
0x12f4   :  { %v2621_v12 = vpop.f32.mrb[57].mxu1 }
0x12f5   :  { %v3581_v13 = vpop.f32.mrb[58].mxu1 }
0x12f6   :  { %v2624_v14 = vpop.f32.mrb[59].mxu1 }
0x12f7   :  { %v2636_v15 = vadd.f32 %v2624_v14, %v2621_v12 }
0x12f9   :  { %v2637_v16 = vadd.f32 %v3580_v11, %v2636_v15 }
0x12fb   :  { %v2638_v17 = vadd.f32 %v3581_v13, %v2637_v16 }
0x12fd   :  { %v2644_v18 = vpack.c.bf16 %v2638_v17, %v2638_v17 }
0x12ff   :  { %3587 = vmatmul.mubr.msk.bf16.vlgmr.msra.gmra.mrb[12].mxu0 %vm1549_vm1, %v2644_v18  ;;  %v3937_v18 = vld [vmem:[%s4424_s24] sm:$0xff]  }
0x1300   :  { %3614 = vmatprep.mubr.msk.bf16.mxu0 %vm4265_vm0, %v4264_v54  ;;  %3599 = vmatpush3.bf16.msra.mxu0 %v3929_v24 }
0x1301   :  { %3600 = vmatprep.subr.bf16.mxu0 %v4264_v54 }
0x1304   :  { %3601 = vmatpush3.bf16.msra.mxu0 %v3930_v42 }
0x1305   :  { %3602 = vmatprep.subr.bf16.mxu0 %v4264_v54 }
0x1308   :  { %3603 = vmatpush3.bf16.msra.mxu0 %v3931_v43 }
0x1309   :  { %3604 = vmatprep.subr.bf16.mxu0 %v4264_v54 }
0x130c   :  { %3605 = vmatpush3.bf16.msra.mxu0 %v3932_v35 }
0x130d   :  { %3606 = vmatprep.subr.bf16.mxu0 %v4264_v54 }
0x1310   :  { %3607 = vmatpush3.bf16.msra.mxu0 %v3933_v44 }
0x1311   :  { %3608 = vmatprep.subr.bf16.mxu0 %v4264_v54 }
0x1314   :  { %3609 = vmatpush3.bf16.msra.mxu0 %v3934_v45 }
0x1315   :  { %3610 = vmatprep.subr.bf16.mxu0 %v4264_v54 }
0x1318   :  { %3611 = vmatpush3.bf16.msra.mxu0 %v3935_v46 }
0x1319   :  { %3612 = vmatprep.subr.bf16.mxu0 %v4264_v54 }
0x131c   :  { %3613 = vmatpush3.bf16.msra.mxu0 %v3936_v47 }
0x13d2   :  { %v2694_v19 = vpop.f32.mrb[12].mxu0 }
0x13d3   :  { %v2700_v21 = vadd.f32 %v2694_v19, %v4698_v26  ;;  %v3588_v25 = vpop.f32.mrb[13].mxu0  ;;  %v3927_v26 = vld [vmem:[%s4841_s23 + $0x10] sm:$0xff]   ;;  %v3938_v19 = vld [vmem:[%s4424_s24 + $0x8] sm:$0xff]  }
0x13d4   :  { %v2697_v27 = vpop.f32.mrb[14].mxu0  ;;  %3591 = vmatpush3.bf16.msra.mxu1 %v3927_v26 }
0x13d5   :  { %v4763_v29 = vadd.f32 %v3304_v20, %v2700_v21  ;;  %v3589_v60 = vpop.f32.mrb[15].mxu0  ;;  %3592 = vmatprep.subr.bf16.mxu1 %v4264_v54 }
0x13d7   :  { %v2714_v30 = vsel %vm1549_vm1, %v4763_v29, 0.0 }
0x13d8   :  { %2715 = vadd.xlane.f32.xlu0 %v2714_v30  ;;  %3593 = vmatpush3.bf16.msra.mxu1 %v3928_v63  ;;  %v3343_v30 = vld [vmem:[%s4419_s14] ss:$0 sm:$0xff] }
0x13d9   :  { %3618 = vmatprep.subr.bf16.mxu1 %v4264_v54 }
0x1465   :  { %v2716_v61 = vpop.xlane.xlu0 %2715 }
0x1466   :  { %v2717_v31 = vmul.f32 0.03125, %v2716_v61 }
0x1468   :  { %v2718_v32 = vsub.f32 %v4763_v29, %v2717_v31 }
0x146a   :  { %v2719_v34 = vmul.f32 %v2718_v32, %v2718_v32 }
0x146c   :  { %v2720_v62 = vsel %vm1549_vm1, %v2719_v34, 0.0  ;;  %v3344_v34 = vld [vmem:[#allocation16] ss:$0 sm:$0xff] }
0x146d   :  { %2721 = vadd.xlane.f32.xlu1 %v2720_v62 }
0x14fa   :  { %v2722_v36 = vpop.xlane.xlu1 %2721 }
0x14fb   :  { %v2723_v33 = vmul.f32 0.03125, %v2722_v36 }
0x14fd   :  { %v2724_v37 = vadd.f32 1e-05, %v2723_v33 }
0x14ff   :  { %3979 = vrsqrt.f32 %v2724_v37 }
0x1509   :  { %v3980_v38 = vpop.eup %3979 }
0x150a   :  { %v2726_v39 = vmul.f32 %v3980_v38, %v2718_v32 }
0x150c   :  { %v2733_v22 = vmul.f32 %v3307_v23, %v2726_v39 }
0x150e   :  { %v2740_v41 = vadd.f32 %v3308_v40, %v2733_v22 }
0x1510   :  { %v2746_v28 = vpack.c.bf16 %v2740_v41, %v2740_v41 }
0x1512   :  { %3595 = vmatmul.mubr.msk.bf16.vlgmr.msra.gmra.mrb[60].mxu1 %vm1549_vm1, %v2746_v28 }
0x1513   :  { %3622 = vmatprep.mubr.msk.bf16.mxu1 %vm4265_vm0, %v4264_v54  ;;  %3619 = vmatpush3.bf16.msra.mxu1 %v3937_v18 }
0x1514   :  { %3620 = vmatprep.subr.bf16.mxu1 %v4264_v54 }
0x1517   :  { %3621 = vmatpush3.bf16.msra.mxu1 %v3938_v19 }
0x15e5   :  { %v2804_v49 = vpop.f32.mrb[60].mxu1 }
0x15e6   :  { %v2805_v52 = vadd.f32 %v3313_v48, %v2804_v49  ;;  %v3596_v55 = vpop.f32.mrb[61].mxu1 }
0x15e7   :  { %v2807_v56 = vpop.f32.mrb[62].mxu1 }
0x15e8   :  { %v2810_v57 = vmul.f32 %v2805_v52, %v2805_v52  ;;  %v3597_v58 = vpop.f32.mrb[63].mxu1 }
0x15ea   :  { %v2811_v59 = vmul.f32 %v2810_v57, %v2805_v52 }
0x15ec   :  { %v2812_v0 = vmul.f32 0.044715, %v2811_v59 }
0x15ee   :  { %v2813_v1 = vadd.f32 %v2812_v0, %v2805_v52 }
0x15f0   :  { %v2814_v2 = vmul.f32 0.7978846, %v2813_v1 }
0x15f2   :  { %3981 = vtanh.f32 %v2814_v2 }
0x15fc   :  { %v3982_v3 = vpop.eup %3981 }
0x15fd   :  { %v2816_v4 = vadd.f32 1.0, %v3982_v3 }
0x15ff   :  { %v2817_v50 = vmul.f32 0.5, %v2816_v4 }
0x1601   :  { %v2818_v51 = vmul.f32 %v2817_v50, %v2805_v52 }
0x1603   :  { %v2836_v53 = vpack.c.bf16 %v2818_v51, %v2818_v51 }
0x1605   :  { %3615 = vmatmul.mubr.bf16.vlgmr.msra.gmra.mrb[16].mxu0 %v2836_v53 }
0x16d8   :  { %v2919_v5 = vpop.f32.mrb[16].mxu0 }
0x16d9   :  { %v2925_v7 = vadd.f32 %v2919_v5, %v4763_v29  ;;  %v3616_v8 = vpop.f32.mrb[17].mxu0  ;;  %v3342_v29 = vld [vmem:[%s4845_s20] ss:$0 sm:$0xff] }
0x16da   :  { %v2922_v9 = vpop.f32.mrb[18].mxu0 }
0x16db   :  { %v3617_v10 = vpop.f32.mrb[19].mxu0  ;;  %v2934_v11 = vadd.f32 %v3341_v6, %v2925_v7 }
0x16dd   :  { %v2937_v12 = vsel %vm1549_vm1, %v2934_v11, 0.0 }
0x16de   :  { %2938 = vadd.xlane.f32.xlu0 %v2937_v12 }
0x176b   :  { %v2939_v13 = vpop.xlane.xlu0 %2938 }
0x176c   :  { %v2940_v14 = vmul.f32 0.03125, %v2939_v13 }
0x176e   :  { %v2941_v15 = vsub.f32 %v2934_v11, %v2940_v14 }
0x1770   :  { %v2942_v16 = vmul.f32 %v2941_v15, %v2941_v15 }
0x1772   :  { %v2943_v17 = vsel %vm1549_vm1, %v2942_v16, 0.0 }
0x1773   :  { %2944 = vadd.xlane.f32.xlu1 %v2943_v17 }
0x1800   :  { %v2945_v20 = vpop.xlane.xlu1 %2944 }
0x1801   :  { %v2946_v21 = vmul.f32 0.03125, %v2945_v20 }
0x1803   :  { %v2947_v25 = vadd.f32 1e-05, %v2946_v21 }
0x1805   :  { %3983 = vrsqrt.f32 %v2947_v25 }
0x180f   :  { %v3984_v27 = vpop.eup %3983 }
0x1810   :  { %v2949_v60 = vmul.f32 %v3984_v27, %v2941_v15 }
0x1812   :  { %v2956_v61 = vmul.f32 %v3342_v29, %v2949_v60 }
0x1814   :  { %v2963_v31 = vadd.f32 %v3343_v30, %v2956_v61 }
0x1816   :  { %v2968_v32 = vpack.c.bf16 %v2963_v31, %v2963_v31 }
0x1818   :  { %3623 = vmatmul.mubr.msk.bf16.vlgmr.msra.gmra.mrb[64].mxu1 %vm1549_vm1, %v2968_v32 }
0x18eb   :  { %v3025_v62 = vpop.f32.mrb[64].mxu1 }
0x18ec   :  { %v3026_v26 = vadd.f32 %v3344_v34, %v3025_v62  ;;  %v3624_v63 = vpop.f32.mrb[65].mxu1 }
0x18ed   :  { %v3028_v54 = vpop.f32.mrb[66].mxu1 }
0x18ee   :  { %3031 = vst [vmem:[%s4434_s27] sm:$0xff] %v3026_v26  ;;  %v3625_v36 = vpop.f32.mrb[67].mxu1 }
0x18ef   :  { %3036 = vsyncpa [#allocation3], 1 }
0x18f0   :  { %3037 = vsyncpa [#allocation5], 1 }
0x18f1   :  { %3038 = vsyncpa [#allocation8], 1 }
0x18f2   :  { %3039 = vsyncpa [#allocation11], 1 }
0x18f3   :  { %3040 = vsyncpa [#allocation14], 1 }
0x18f4   :  { %3041 = vsyncpa [#allocation17], 1 }

</bundles_post_ra>
